<compile_context>
chip_gen: v7x
topology: tpu7x:2x2x1
jax: 0.10.0
libtpu: 0.0.40
codegen_flags: <defaults>
</compile_context>

<pallas_src>
import jax
import jax.numpy as jnp
from jax.experimental import pallas as pl
from jax.experimental.pallas import tpu as pltpu

D_IN = 3840          # fixed by the module (nn.LayerNorm(3840), nn.Linear(3840, ...))
LN_EPS = 1e-5        # PyTorch nn.LayerNorm default


def _round_up(x, m):
    return (x + m - 1) // m * m


def _vmem_capacity_bytes() -> int:
    """Physical VMEM per TensorCore; conservative 64 MiB (v7x) if the query fails."""
    try:
        info = pltpu.get_tpu_info()
        for attr in ("vmem_capacity_bytes", "vmem_bytes", "vmem_size_bytes"):
            v = getattr(info, attr, None)
            if isinstance(v, int) and v > 0:
                return v
    except Exception:
        pass
    return 64 * 1024 * 1024


def _ln_proj_kernel(x_ref, w_ref, b_ref, o_ref):
    # x_ref: (tm, D)  input dtype
    # w_ref: (D, tn)  bf16 folded weight tile (gamma already folded in); constant across the
    #                 inner row sweep -> Pallas skips the re-DMA.
    # b_ref: (1, tn)  f32 folded bias (beta @ W^T)
    # o_ref: (tm, tn) output dtype
    x = x_ref[...].astype(jnp.float32)
    mean = jnp.mean(x, axis=-1, keepdims=True)
    xc = x - mean
    var = jnp.mean(xc * xc, axis=-1, keepdims=True)
    xhat = (xc * jax.lax.rsqrt(var + LN_EPS)).astype(w_ref.dtype)     # bf16 for the MXU
    acc = jnp.dot(xhat, w_ref[...], preferred_element_type=jnp.float32)
    o_ref[...] = (acc + b_ref[...]).astype(o_ref.dtype)


def audio_projector_nopool(encodings, ln_weight, ln_bias, proj_weight, *,
                           matmul_dtype=jnp.bfloat16):
    """Forward pass of AudioProjectorNoPool.

    encodings:   (B, S, 3840)
    ln_weight:   (3840,)         nn.LayerNorm.weight (gamma)
    ln_bias:     (3840,)         nn.LayerNorm.bias   (beta)
    proj_weight: (N, 3840)       nn.Linear.weight (PyTorch layout, bias=False)
    returns:     (B, S, N)
    """
    B, S, D = encodings.shape
    assert D == D_IN
    N, D_w = proj_weight.shape
    assert D_w == D_IN
    M = B * S

    # One-time fold of the LayerNorm affine into the projection (pure algebra):
    #   LN(x) @ W^T = ((x-mu)*inv) @ (gamma[:,None]*W^T) + beta @ W^T
    f32 = jnp.float32
    w_f32 = proj_weight.astype(f32).T                                       # (D, N)
    w_eff = (ln_weight.astype(f32)[:, None] * w_f32).astype(matmul_dtype)   # (D, N) bf16
    bias_eff = jnp.dot(ln_bias.astype(f32)[None, :], w_f32,
                       precision=jax.lax.Precision.HIGHEST)                 # (1, N) f32

    x_item = jnp.dtype(encodings.dtype).itemsize
    o_item = jnp.dtype(encodings.dtype).itemsize
    w_item = jnp.dtype(matmul_dtype).itemsize

    # Per-generation VMEM budget / row tile.
    vmem_cap = _vmem_capacity_bytes()
    big_vmem = vmem_cap >= 96 * 1024 * 1024          # v5e / v6e (128 MiB)
    budget = vmem_cap - (16 << 20) if big_vmem else vmem_cap - (8 << 20)
    tm_pref = 512 if big_vmem else 256

    N_pad128 = _round_up(N, 128)
    tm = min(tm_pref, _round_up(M, 16))              # soften tiny-M clamp (sublane multiple)
    tn = N_pad128                                     # try full weight residency first

    def vmem_bytes(tm_, tn_):
        return (2 * D * tn_ * w_item                 # weight tile (double-buffered, bf16)
                + 2 * tm_ * D * x_item               # x row block (double-buffered)
                + 2 * tm_ * tn_ * o_item             # out tile  (double-buffered)
                + 2 * tn_ * 4                        # folded bias
                + (2 << 20))                         # headroom for compiler scratch

    # Shrink the column tile (then the row tile) only if the resident plan overflows the budget.
    while vmem_bytes(tm, tn) > budget and tn > 512:
        tn = _round_up(tn // 2, 128)
    while vmem_bytes(tm, tn) > budget and tm > 64:
        tm = max(64, tm // 2)

    M_pad = _round_up(M, tm)
    N_pad = _round_up(N, tn)

    x2d = encodings.reshape(M, D)
    if M_pad != M:
        x2d = jnp.pad(x2d, ((0, M_pad - M), (0, 0)))
    if N_pad != N:
        w_eff = jnp.pad(w_eff, ((0, 0), (0, N_pad - N)))
        bias_eff = jnp.pad(bias_eff, ((0, 0), (0, N_pad - N)))

    n_j = N_pad // tn        # weight column tiles (== 1 in the resident case)
    n_i = M_pad // tm        # row blocks

    cost = pl.CostEstimate(
        flops=2 * M_pad * D * N_pad,
        transcendentals=M_pad * n_j,                                  # rsqrt per row per j-sweep
        bytes_accessed=(M_pad * D * x_item) * n_j                     # x (re-streamed per j tile)
                       + D * N_pad * w_item                           # weight (once)
                       + M_pad * N_pad * o_item                       # output
                       + N_pad * 4,                                   # bias
    )

    out = pl.pallas_call(
        _ln_proj_kernel,
        out_shape=jax.ShapeDtypeStruct((M_pad, N_pad), encodings.dtype),
        grid_spec=pltpu.PrefetchScalarGridSpec(
            num_scalar_prefetch=0,
            grid=(n_j, n_i),                                          # j outer (weight-stationary), i inner
            in_specs=[
                pl.BlockSpec((tm, D), lambda j, i: (i, 0)),           # x rows
                pl.BlockSpec((D, tn), lambda j, i: (0, j)),           # weight: constant across inner i sweep
                pl.BlockSpec((1, tn), lambda j, i: (0, j)),           # folded bias
            ],
            out_specs=pl.BlockSpec((tm, tn), lambda j, i: (i, j)),
        ),
        compiler_params=pltpu.CompilerParams(
            dimension_semantics=("parallel", "parallel"),             # no accumulator -> both axes independent
            vmem_limit_bytes=int(budget),
        ),
        cost_estimate=cost,
    )(x2d, w_eff, bias_eff)

    return out[:M, :N].reshape(B, S, N)


def _reference(encodings, ln_weight, ln_bias, proj_weight):
    x = encodings.astype(jnp.float32)
    mean = jnp.mean(x, axis=-1, keepdims=True)
    var = jnp.mean((x - mean) ** 2, axis=-1, keepdims=True)
    xn = (x - mean) * jax.lax.rsqrt(var + LN_EPS) * ln_weight.astype(jnp.float32) \
         + ln_bias.astype(jnp.float32)
    return jnp.einsum(
        "bsd,nd->bsn", xn, proj_weight.astype(jnp.float32),
        precision=jax.lax.Precision.HIGHEST,
    )


if __name__ == "__main__":
    # In-feature dim is hard-coded to 3840 by the module; output_embedding_size is a
    # constructor arg, so use a small 256 for the test.
    B, S, N_OUT = 2, 8, 256

    key = jax.random.PRNGKey(0)
    kx, kw, kg, kb = jax.random.split(key, 4)

    encodings = jax.random.normal(kx, (B, S, D_IN), dtype=jnp.float32)
    # Non-trivial LN affine so the gamma/beta folding path is actually exercised.
    ln_weight = 1.0 + 0.1 * jax.random.normal(kg, (D_IN,), dtype=jnp.float32)
    ln_bias = 0.1 * jax.random.normal(kb, (D_IN,), dtype=jnp.float32)
    proj_weight = 0.02 * jax.random.normal(kw, (N_OUT, D_IN), dtype=jnp.float32)  # (out, in)

    out = audio_projector_nopool(encodings, ln_weight, ln_bias, proj_weight)
    out = jax.block_until_ready(out)

    ref = _reference(encodings, ln_weight, ln_bias, proj_weight)
    assert out.shape == (B, S, N_OUT)
    # Tolerance accounts for the bf16 matmul operands (weight + normalized rows are cast to
    # bf16 for the MXU; accumulation is f32) vs. the all-f32 HIGHEST-precision reference.
    assert jnp.allclose(out, ref, atol=3e-2, rtol=3e-2), float(jnp.max(jnp.abs(out - ref)))

    print("KERNEL_OK")
</pallas_src>

<mosaic_0001>
module attributes {stable_mosaic.version = 11 : i64} {
  func.func @_ln_proj_kernel(%arg0: i32, %arg1: i32, %arg2: memref<16x3840xf32, #tpu.memory_space<vmem>>, %arg3: memref<3840x256xbf16, #tpu.memory_space<vmem>>, %arg4: memref<1x256xf32, #tpu.memory_space<vmem>>, %arg5: memref<16x256xf32, #tpu.memory_space<vmem>>) attributes {dimension_semantics = [#tpu.dimension_semantics<parallel>, #tpu.dimension_semantics<parallel>], iteration_bounds = array<i64: 1, 1>, scalar_prefetch = 0 : i64, scratch_operands = 0 : i64, tpu.core_type = #tpu.core_type<tc>, window_params = [{transform_indices = @transform_0, window_bounds = array<i64: 16, 3840>}, {transform_indices = @transform_1, window_bounds = array<i64: 3840, 256>}, {transform_indices = @transform_2, window_bounds = array<i64: 1, 256>}, {transform_indices = @transform_3, window_bounds = array<i64: 16, 256>}]} {
    %c0 = arith.constant 0 : index
    %c0_0 = arith.constant 0 : index
    %0 = vector.load %arg2[%c0, %c0_0] : memref<16x3840xf32, #tpu.memory_space<vmem>>, vector<16x3840xf32>
    %cst = arith.constant dense<0.000000e+00> : vector<16xf32>
    %1 = vector.multi_reduction <add>, %0, %cst [1] : vector<16x3840xf32> to vector<16xf32>
    %2 = vector.shape_cast %1 : vector<16xf32> to vector<16x1xf32>
    %cst_1 = arith.constant 3.840000e+03 : f32
    %3 = vector.broadcast %cst_1 : f32 to vector<16x1xf32>
    %4 = arith.divf %2, %3 : vector<16x1xf32>
    %5 = vector.broadcast %4 : vector<16x1xf32> to vector<16x3840xf32>
    %6 = arith.subf %0, %5 : vector<16x3840xf32>
    %7 = arith.mulf %6, %6 : vector<16x3840xf32>
    %cst_2 = arith.constant dense<0.000000e+00> : vector<16xf32>
    %8 = vector.multi_reduction <add>, %7, %cst_2 [1] : vector<16x3840xf32> to vector<16xf32>
    %9 = vector.shape_cast %8 : vector<16xf32> to vector<16x1xf32>
    %cst_3 = arith.constant 3.840000e+03 : f32
    %10 = vector.broadcast %cst_3 : f32 to vector<16x1xf32>
    %11 = arith.divf %9, %10 : vector<16x1xf32>
    %cst_4 = arith.constant 9.99999974E-6 : f32
    %12 = vector.broadcast %cst_4 : f32 to vector<16x1xf32>
    %13 = arith.addf %11, %12 : vector<16x1xf32>
    %14 = math.rsqrt %13 : vector<16x1xf32>
    %15 = vector.broadcast %14 : vector<16x1xf32> to vector<16x3840xf32>
    %16 = arith.mulf %6, %15 : vector<16x3840xf32>
    %17 = arith.truncf %16 : vector<16x3840xf32> to vector<16x3840xbf16>
    %c0_5 = arith.constant 0 : index
    %c0_6 = arith.constant 0 : index
    %18 = vector.load %arg3[%c0_5, %c0_6] : memref<3840x256xbf16, #tpu.memory_space<vmem>>, vector<3840x256xbf16>
    %cst_7 = arith.constant dense<0.000000e+00> : vector<16x256xf32>
    %19 = tpu.matmul %17, %18, %cst_7 {dimension_numbers = #tpu.dot_dimension_numbers<[1], [0], [0], [1], [0, 0, 1, 1], [], []>} : vector<16x3840xbf16>, vector<3840x256xbf16>, vector<16x256xf32> -> vector<16x256xf32>
    %c0_8 = arith.constant 0 : index
    %c0_9 = arith.constant 0 : index
    %20 = vector.load %arg4[%c0_8, %c0_9] : memref<1x256xf32, #tpu.memory_space<vmem>>, vector<1x256xf32>
    %21 = vector.broadcast %20 : vector<1x256xf32> to vector<16x256xf32>
    %22 = arith.addf %19, %21 : vector<16x256xf32>
    %c0_10 = arith.constant 0 : index
    %c0_11 = arith.constant 0 : index
    %23 = vector.load %arg5[%c0_10, %c0_11] : memref<16x256xf32, #tpu.memory_space<vmem>>, vector<16x256xf32>
    tpu.vector_store %arg5[%c0_10, %c0_11], %22 {strides = array<i32>} : memref<16x256xf32, #tpu.memory_space<vmem>>, vector<16x256xf32>,
    return
  }
  func.func @transform_0(%arg0: i32, %arg1: i32) -> (i32, i32) {
    %c0_i32 = arith.constant 0 : i32
    %c0_i32_0 = arith.constant 0 : i32
    return %arg1, %c0_i32 : i32, i32
  }
  func.func @transform_1(%arg0: i32, %arg1: i32) -> (i32, i32) {
    %c0_i32 = arith.constant 0 : i32
    %c0_i32_0 = arith.constant 0 : i32
    return %c0_i32, %arg0 : i32, i32
  }
  func.func @transform_2(%arg0: i32, %arg1: i32) -> (i32, i32) {
    %c0_i32 = arith.constant 0 : i32
    %c0_i32_0 = arith.constant 0 : i32
    return %c0_i32, %arg0 : i32, i32
  }
  func.func @transform_3(%arg0: i32, %arg1: i32) -> (i32, i32) {
    %c0_i32 = arith.constant 0 : i32
    return %arg1, %arg0 : i32, i32
  }
}

</mosaic_0001>

<bundles_post_ra>
// kernel: tpu_custom_call.1
= control target key start
LH: loop header
LB: loop body
LE: loop exit
PB: predicated region body
PF: predicated region fallthrough
CT: control target
= control target key end

     0   :  { %8 = vsyncpa [#allocation3], 0  ;;  %s6172_s0 = inlined_call_operand.hbm [shape: f32[16,3840], index: 0, kind: input, shape index: {}]   ;;  %s6173_s1 = inlined_call_operand.hbm [shape: bf16[3840,256], index: 1, kind: input, shape index: {}]   ;;  %s6174_s2 = inlined_call_operand.hbm [shape: f32[1,256], index: 2, kind: input, shape index: {}]   ;;  %s6175_s3 = inlined_call_operand.hbm [shape: f32[16,256], index: 3, kind: output, shape index: {}]  }
   0x1   :  { %9 = vsyncpa [#allocation6], 0 }
   0x2   :  { %10 = vsyncpa [#allocation4], 0  ;;  %s5444_s12 = smov [#allocation5]   ;;  %s5350_s16 = scalar_lea.hbm %s6173_s1, 61440 }
   0x3   :  { %s28_s13 = sshll.u32 %s5444_s12, 4  ;;  %p5351_p0 = scmp.ne.s32.totalorder %s6173_s1, %s5350_s16  ;;  %s29_s13 = int_to_ptr.vmem [resolvable:$true] %s28_s13 }
   0x4   :  { %p5354_p1 = scmp.lt.u32.totalorder %s5350_s16, %s6173_s1 }
   0x6   :  { %p5356_p2 = pnand %p5354_p1, %p5351_p0 }
   0x8   :  { %5359 = shalt.err (!%p5356_p2)
}
   0x9   :  { %s5360_s21 = scalar_lea.vmem %s29_s13, 61440  ;;  %p5365_p4 = scmp.lt.s32.totalorder %s29_s13, %s29_s13 }
   0xa   :  { %p5361_p3 = scmp.ne.s32.totalorder %s29_s13, %s5360_s21  ;;  %p5366_p5 = scmp.lt.s32.totalorder %s5360_s21, %s5360_s21 }
   0xc   :  { %p5367_p6 = por %p5366_p5, %p5365_p4 }
   0xe   :  { %p5368_p7 = pnand %p5367_p6, %p5361_p3 }
  0x10   :  { %5371 = shalt.err (!%p5368_p7)
}
  0x11   :  { %s5445_s22 = smov 128   ;;  %s5446_s23 = smov 8  }
  0x12   :  { %34 = dma.hbm_to_vmem [thread:$0]  %s6173_s1, 61440, %s29_s13, [#allocation6], %s5445_s22, %s5445_s22, %s5446_s23  }
  0x13   :  { %s5447_s26 = smov [#allocation2]   ;;  %s5372_s30 = scalar_lea.hbm %s6172_s0, 7680 }
  0x14   :  { %s16_s27 = sshll.u32 %s5447_s26, 4  ;;  %p5373_p8 = scmp.ne.s32.totalorder %s6172_s0, %s5372_s30  ;;  %s17_s27 = int_to_ptr.vmem [resolvable:$true] %s16_s27 }
  0x15   :  { %p5376_p9 = scmp.lt.u32.totalorder %s5372_s30, %s6172_s0 }
  0x17   :  { %p5378_p10 = pnand %p5376_p9, %p5373_p8 }
  0x19   :  { %5381 = shalt.err (!%p5378_p10)
}
  0x1a   :  { %s5382_s8 = scalar_lea.vmem %s17_s27, 7680  ;;  %p5387_p12 = scmp.lt.s32.totalorder %s17_s27, %s17_s27 }
  0x1b   :  { %p5383_p11 = scmp.ne.s32.totalorder %s17_s27, %s5382_s8  ;;  %p5388_p13 = scmp.lt.s32.totalorder %s5382_s8, %s5382_s8 }
  0x1d   :  { %p5389_p0 = por %p5388_p13, %p5387_p12 }
  0x1f   :  { %p5390_p1 = pnand %p5389_p0, %p5383_p11 }
  0x21   :  { %5393 = shalt.err (!%p5390_p1)
}
  0x22   :  { %s5448_s1 = smov 3840   ;;  %s5449_s9 = smov 240  }
  0x23   :  { %22 = dma.hbm_to_vmem [thread:$0]  %s6172_s0, 7680, %s17_s27, [#allocation3], %s5448_s1, %s5448_s1, %s5449_s9  }
  0x24   :  { %s5450_s12 = smov [#allocation7]   ;;  %s5394_s16 = scalar_lea.hbm %s6174_s2, 32 }
  0x25   :  { %s41_s13 = sshll.u32 %s5450_s12, 4  ;;  %p5395_p2 = scmp.ne.s32.totalorder %s6174_s2, %s5394_s16  ;;  %s42_s13 = int_to_ptr.vmem [resolvable:$true] %s41_s13 }
  0x26   :  { %p5398_p3 = scmp.lt.u32.totalorder %s5394_s16, %s6174_s2 }
  0x28   :  { %p5400_p4 = pnand %p5398_p3, %p5395_p2 }
  0x2a   :  { %5403 = shalt.err (!%p5400_p4)
}
  0x2b   :  { %s5404_s21 = scalar_lea.vmem %s42_s13, 32  ;;  %p5409_p6 = scmp.lt.s32.totalorder %s42_s13, %s42_s13 }
  0x2c   :  { %p5405_p5 = scmp.ne.s32.totalorder %s42_s13, %s5404_s21  ;;  %p5410_p7 = scmp.lt.s32.totalorder %s5404_s21, %s5404_s21 }
  0x2e   :  { %p5411_p8 = por %p5410_p7, %p5409_p6 }
  0x30   :  { %p5412_p9 = pnand %p5411_p8, %p5405_p5 }
  0x32   :  { %5415 = shalt.err (!%p5412_p9)
}
  0x33   :  { %44 = dma.hbm_to_vmem [thread:$0]  %s6174_s2, 32, %s42_s13, [#allocation6]  }
  0x34   :  { %5438 = dma.done.wait [#allocation3], 7680  }
  0x35   :  { %5439 = vsyncadd [#allocation3], 4294959616 }
  0x36   :  { %5440 = dma.done.wait [#allocation6], 61472  }
  0x37   :  { %5441 = vsyncadd [#allocation6], 4294905824  ;;  %v54_v0 = vld [vmem:[#allocation2] sm:$0xff]  ;;  %v55_v1 = vld [vmem:[#allocation2 + $0x8] sm:$0xff]  ;;  %s5451_s2 = smov [#allocation8]  }
  0x38   :  { %v56_v2 = vld [vmem:[#allocation2 + $0x10] sm:$0xff]  ;;  %v114_v3 = vadd.f32 %v55_v1, %v54_v0  ;;  %v57_v4 = vld [vmem:[#allocation2 + $0x18] sm:$0xff]  ;;  %v58_v6 = vld [vmem:[#allocation2 + $0x20] sm:$0xff]  ;;  %s4003_s23 = sshll.u32 %s5451_s2, 4  ;;  %s4004_s23 = int_to_ptr.vmem [resolvable:$true] %s4003_s23 }
  0x39   :  { %v59_v8 = vld [vmem:[#allocation2 + $0x28] sm:$0xff]  ;;  %v60_v10 = vld [vmem:[#allocation2 + $0x30] sm:$0xff]  ;;  %v61_v11 = vld [vmem:[#allocation2 + $0x38] sm:$0xff]  ;;  %s5416_s24 = scalar_lea.vmem %s4004_s23, 512  ;;  %p5421_p11 = scmp.lt.s32.totalorder %s4004_s23, %s4004_s23 }
  0x3a   :  { %v115_v5 = vadd.f32 %v114_v3, %v56_v2  ;;  %v84_v13 = vld [vmem:[#allocation2 + $0xf0] sm:$0xff]  ;;  %v85_v14 = vld [vmem:[#allocation2 + $0xf8] sm:$0xff]  ;;  %v86_v15 = vld [vmem:[#allocation2 + $0x100] sm:$0xff]  ;;  %p5417_p10 = scmp.ne.s32.totalorder %s4004_s23, %s5416_s24  ;;  %p5422_p12 = scmp.lt.s32.totalorder %s5416_s24, %s5416_s24 }
  0x3b   :  { %v145_v17 = vadd.f32 %v85_v14, %v84_v13  ;;  %v62_v18 = vld [vmem:[#allocation2 + $0x40] sm:$0xff]  ;;  %v87_v19 = vld [vmem:[#allocation2 + $0x108] sm:$0xff]  ;;  %v88_v23 = vld [vmem:[#allocation2 + $0x110] sm:$0xff] }
  0x3c   :  { %v116_v7 = vadd.f32 %v115_v5, %v57_v4  ;;  %v63_v22 = vld [vmem:[#allocation2 + $0x48] sm:$0xff]  ;;  %v64_v26 = vld [vmem:[#allocation2 + $0x50] sm:$0xff]  ;;  %v89_v27 = vld [vmem:[#allocation2 + $0x118] sm:$0xff]  ;;  %p5423_p13 = por %p5422_p12, %p5421_p11 }
  0x3d   :  { %v146_v21 = vadd.f32 %v145_v17, %v86_v15  ;;  %v65_v30 = vld [vmem:[#allocation2 + $0x58] sm:$0xff]  ;;  %v90_v31 = vld [vmem:[#allocation2 + $0x120] sm:$0xff]  ;;  %v91_v34 = vld [vmem:[#allocation2 + $0x128] sm:$0xff] }
  0x3e   :  { %v117_v9 = vadd.f32 %v116_v7, %v58_v6  ;;  %v66_v32 = vld [vmem:[#allocation2 + $0x60] sm:$0xff]  ;;  %v67_v36 = vld [vmem:[#allocation2 + $0x68] sm:$0xff]  ;;  %v92_v37 = vld [vmem:[#allocation2 + $0x130] sm:$0xff]  ;;  %p5424_p0 = pnand %p5423_p13, %p5417_p10 }
  0x3f   :  { %v147_v25 = vadd.f32 %v146_v21, %v87_v19  ;;  %v68_v40 = vld [vmem:[#allocation2 + $0x70] sm:$0xff]  ;;  %v93_v41 = vld [vmem:[#allocation2 + $0x138] sm:$0xff]  ;;  %v94_v45 = vld [vmem:[#allocation2 + $0x140] sm:$0xff] }
  0x40   :  { %v118_v12 = vadd.f32 %v117_v9, %v59_v8  ;;  %v69_v44 = vld [vmem:[#allocation2 + $0x78] sm:$0xff]  ;;  %v70_v48 = vld [vmem:[#allocation2 + $0x80] sm:$0xff]  ;;  %v95_v49 = vld [vmem:[#allocation2 + $0x148] sm:$0xff] }
  0x41   :  { %v148_v29 = vadd.f32 %v147_v25, %v88_v23  ;;  %v71_v52 = vld [vmem:[#allocation2 + $0x88] sm:$0xff]  ;;  %v96_v53 = vld [vmem:[#allocation2 + $0x150] sm:$0xff]  ;;  %v97_v57 = vld [vmem:[#allocation2 + $0x158] sm:$0xff] }
  0x42   :  { %v119_v16 = vadd.f32 %v118_v12, %v60_v10  ;;  %v72_v56 = vld [vmem:[#allocation2 + $0x90] sm:$0xff]  ;;  %v73_v60 = vld [vmem:[#allocation2 + $0x98] sm:$0xff]  ;;  %v98_v61 = vld [vmem:[#allocation2 + $0x160] sm:$0xff] }
  0x43   :  { %v149_v35 = vadd.f32 %v148_v29, %v89_v27  ;;  %v74_v0 = vld [vmem:[#allocation2 + $0xa0] sm:$0xff]  ;;  %v99_v1 = vld [vmem:[#allocation2 + $0x168] sm:$0xff]  ;;  %v100_v5 = vld [vmem:[#allocation2 + $0x170] sm:$0xff] }
  0x44   :  { %v120_v20 = vadd.f32 %v119_v16, %v61_v11  ;;  %v75_v4 = vld [vmem:[#allocation2 + $0xa8] sm:$0xff]  ;;  %v76_v8 = vld [vmem:[#allocation2 + $0xb0] sm:$0xff]  ;;  %v101_v9 = vld [vmem:[#allocation2 + $0x178] sm:$0xff] }
  0x45   :  { %v150_v39 = vadd.f32 %v149_v35, %v90_v31  ;;  %v77_v12 = vld [vmem:[#allocation2 + $0xb8] sm:$0xff]  ;;  %v102_v13 = vld [vmem:[#allocation2 + $0x180] sm:$0xff]  ;;  %v103_v17 = vld [vmem:[#allocation2 + $0x188] sm:$0xff] }
  0x46   :  { %v121_v24 = vadd.f32 %v120_v20, %v62_v18  ;;  %v78_v16 = vld [vmem:[#allocation2 + $0xc0] sm:$0xff]  ;;  %v79_v20 = vld [vmem:[#allocation2 + $0xc8] sm:$0xff]  ;;  %v104_v21 = vld [vmem:[#allocation2 + $0x190] sm:$0xff] }
  0x47   :  { %v151_v43 = vadd.f32 %v150_v39, %v91_v34  ;;  %v105_v25 = vld [vmem:[#allocation2 + $0x198] sm:$0xff]  ;;  %v106_v29 = vld [vmem:[#allocation2 + $0x1a0] sm:$0xff] }
  0x48   :  { %v122_v28 = vadd.f32 %v121_v24, %v63_v22  ;;  %v80_v24 = vld [vmem:[#allocation2 + $0xd0] sm:$0xff] }
  0x49   :  { %v152_v47 = vadd.f32 %v151_v43, %v92_v37  ;;  %v108_v37 = vld [vmem:[#allocation2 + $0x1b0] sm:$0xff]  ;;  %v110_v43 = vld [vmem:[#allocation2 + $0x1c0] sm:$0xff] }
  0x4a   :  { %v123_v33 = vadd.f32 %v122_v28, %v64_v26  ;;  %v81_v28 = vld [vmem:[#allocation2 + $0xd8] sm:$0xff] }
  0x4b   :  { %v153_v51 = vadd.f32 %v152_v47, %v93_v41 }
  0x4c   :  { %v124_v38 = vadd.f32 %v123_v33, %v65_v30  ;;  %v107_v33 = vld [vmem:[#allocation2 + $0x1a8] sm:$0xff] }
  0x4d   :  { %v154_v55 = vadd.f32 %v153_v51, %v94_v45 }
  0x4e   :  { %v125_v42 = vadd.f32 %v124_v38, %v66_v32  ;;  %v82_v32 = vld [vmem:[#allocation2 + $0xe0] sm:$0xff] }
  0x4f   :  { %v155_v59 = vadd.f32 %v154_v55, %v95_v49  ;;  %v4568_v55 = vld [vmem:[#allocation5 + $0x704] ss:$8 sps:$4 sm:$0xff]  }
  0x50   :  { %v126_v46 = vadd.f32 %v125_v42, %v67_v36  ;;  %v83_v36 = vld [vmem:[#allocation2 + $0xe8] sm:$0xff]  ;;  %3650 = vmatprep.subr.bf16.mxu0 %v4568_v55 }
  0x51   :  { %v156_v63 = vadd.f32 %v155_v59, %v96_v53  ;;  %v4574_v59 = vld [vmem:[#allocation5 + $0x714] ss:$8 sps:$4 sm:$0xff]  }
  0x52   :  { %v127_v50 = vadd.f32 %v126_v46, %v68_v40  ;;  %v109_v40 = vld [vmem:[#allocation2 + $0x1b8] sm:$0xff]  ;;  %v111_v46 = vld [vmem:[#allocation2 + $0x1c8] sm:$0xff] }
  0x53   :  { %v157_v3 = vadd.f32 %v156_v63, %v97_v57  ;;  %v4571_v57 = vld [vmem:[#allocation5 + $0x700] ss:$8 sps:$4 sm:$0xff]   ;;  %v4580_v63 = vld [vmem:[#allocation5 + $0x724] ss:$8 sps:$4 sm:$0xff]  }
  0x54   :  { %v128_v54 = vadd.f32 %v127_v50, %v69_v44  ;;  %v113_v50 = vld [vmem:[#allocation2 + $0x1d8] sm:$0xff]  ;;  %3651 = vmatpush1.bf16.msra.mxu0 %v4571_v57 }
  0x55   :  { %v158_v7 = vadd.f32 %v157_v3, %v98_v61  ;;  %v4577_v61 = vld [vmem:[#allocation5 + $0x710] ss:$8 sps:$4 sm:$0xff]   ;;  %3652 = vmatprep.subr.bf16.mxu0 %v4574_v59  ;;  %v4586_v3 = vld [vmem:[#allocation5 + $0x734] ss:$8 sps:$4 sm:$0xff]  }
  0x56   :  { %v129_v58 = vadd.f32 %v128_v54, %v70_v48  ;;  %v112_v48 = vld [vmem:[#allocation2 + $0x1d0] sm:$0xff]  ;;  %v4566_v54 = vld [vmem:[#allocation5 + $0x4] ss:$8 sps:$4 sm:$0xff]  }
  0x57   :  { %v159_v11 = vadd.f32 %v158_v7, %v99_v1  ;;  %3349 = vmatprep.subr.bf16.mxu1 %v4566_v54  ;;  %v4583_v1 = vld [vmem:[#allocation5 + $0x720] ss:$8 sps:$4 sm:$0xff]   ;;  %v4592_v7 = vld [vmem:[#allocation5 + $0x744] ss:$8 sps:$4 sm:$0xff]  }
  0x58   :  { %v130_v62 = vadd.f32 %v129_v58, %v71_v52  ;;  %v4572_v58 = vld [vmem:[#allocation5 + $0x14] ss:$8 sps:$4 sm:$0xff]   ;;  %3653 = vmatpush1.bf16.msra.mxu0 %v4577_v61 }
  0x59   :  { %v160_v15 = vadd.f32 %v159_v11, %v100_v5  ;;  %3654 = vmatprep.subr.bf16.mxu0 %v4580_v63  ;;  %v4589_v5 = vld [vmem:[#allocation5 + $0x730] ss:$8 sps:$4 sm:$0xff]   ;;  %v4598_v11 = vld [vmem:[#allocation5 + $0x754] ss:$8 sps:$4 sm:$0xff]  }
  0x5a   :  { %v131_v2 = vadd.f32 %v130_v62, %v72_v56  ;;  %v4570_v56 = vld [vmem:[#allocation5] ss:$8 sps:$4 sm:$0xff]   ;;  %v4578_v62 = vld [vmem:[#allocation5 + $0x24] ss:$8 sps:$4 sm:$0xff]  }
  0x5b   :  { %v161_v19 = vadd.f32 %v160_v15, %v101_v9  ;;  %3350 = vmatpush1.bf16.msra.mxu1 %v4570_v56  ;;  %v4595_v9 = vld [vmem:[#allocation5 + $0x740] ss:$8 sps:$4 sm:$0xff]   ;;  %v4604_v15 = vld [vmem:[#allocation5 + $0x764] ss:$8 sps:$4 sm:$0xff]  }
  0x5c   :  { %v132_v6 = vadd.f32 %v131_v2, %v73_v60  ;;  %v4576_v60 = vld [vmem:[#allocation5 + $0x10] ss:$8 sps:$4 sm:$0xff]   ;;  %3351 = vmatprep.subr.bf16.mxu1 %v4572_v58  ;;  %v4584_v2 = vld [vmem:[#allocation5 + $0x34] ss:$8 sps:$4 sm:$0xff]   ;;  %3655 = vmatpush1.bf16.msra.mxu0 %v4583_v1 }
  0x5d   :  { %v162_v23 = vadd.f32 %v161_v19, %v102_v13  ;;  %3656 = vmatprep.subr.bf16.mxu0 %v4586_v3  ;;  %v4601_v13 = vld [vmem:[#allocation5 + $0x750] ss:$8 sps:$4 sm:$0xff]   ;;  %v4610_v19 = vld [vmem:[#allocation5 + $0x774] ss:$8 sps:$4 sm:$0xff]  }
  0x5e   :  { %v133_v10 = vadd.f32 %v132_v6, %v74_v0  ;;  %v4582_v0 = vld [vmem:[#allocation5 + $0x20] ss:$8 sps:$4 sm:$0xff]   ;;  %v4590_v6 = vld [vmem:[#allocation5 + $0x44] ss:$8 sps:$4 sm:$0xff]   ;;  %v5297_v58 = vld [vmem:[#allocation2 + $0x38] sm:$0xff] }
  0x5f   :  { %v163_v27 = vadd.f32 %v162_v23, %v103_v17  ;;  %3352 = vmatpush1.bf16.msra.mxu1 %v4576_v60  ;;  %v4607_v17 = vld [vmem:[#allocation5 + $0x760] ss:$8 sps:$4 sm:$0xff]   ;;  %v4616_v23 = vld [vmem:[#allocation5 + $0x784] ss:$8 sps:$4 sm:$0xff]  }
  0x60   :  { %v134_v14 = vadd.f32 %v133_v10, %v75_v4  ;;  %3353 = vmatprep.subr.bf16.mxu1 %v4578_v62  ;;  %v4588_v4 = vld [vmem:[#allocation5 + $0x30] ss:$8 sps:$4 sm:$0xff]   ;;  %v4596_v10 = vld [vmem:[#allocation5 + $0x54] ss:$8 sps:$4 sm:$0xff]   ;;  %3657 = vmatpush1.bf16.msra.mxu0 %v4589_v5  ;;  %v5298_v62 = vld [vmem:[#allocation2 + $0x40] sm:$0xff] }
  0x61   :  { %v164_v31 = vadd.f32 %v163_v27, %v104_v21  ;;  %3658 = vmatprep.subr.bf16.mxu0 %v4592_v7  ;;  %v4613_v21 = vld [vmem:[#allocation5 + $0x770] ss:$8 sps:$4 sm:$0xff]   ;;  %v4622_v27 = vld [vmem:[#allocation5 + $0x794] ss:$8 sps:$4 sm:$0xff]  }
  0x62   :  { %v135_v18 = vadd.f32 %v134_v14, %v76_v8  ;;  %v4594_v8 = vld [vmem:[#allocation5 + $0x40] ss:$8 sps:$4 sm:$0xff]   ;;  %v4602_v14 = vld [vmem:[#allocation5 + $0x64] ss:$8 sps:$4 sm:$0xff]  }
  0x63   :  { %v165_v35 = vadd.f32 %v164_v31, %v105_v25  ;;  %3354 = vmatpush1.bf16.msra.mxu1 %v4582_v0  ;;  %v4619_v25 = vld [vmem:[#allocation5 + $0x780] ss:$8 sps:$4 sm:$0xff]  }
  0x64   :  { %v136_v22 = vadd.f32 %v135_v18, %v77_v12  ;;  %3355 = vmatprep.subr.bf16.mxu1 %v4584_v2  ;;  %v4600_v12 = vld [vmem:[#allocation5 + $0x50] ss:$8 sps:$4 sm:$0xff]   ;;  %3659 = vmatpush1.bf16.msra.mxu0 %v4595_v9  ;;  %v4608_v18 = vld [vmem:[#allocation5 + $0x74] ss:$8 sps:$4 sm:$0xff]  }
  0x65   :  { %v166_v39 = vadd.f32 %v165_v35, %v106_v29  ;;  %3660 = vmatprep.subr.bf16.mxu0 %v4598_v11  ;;  %v4625_v29 = vld [vmem:[#allocation5 + $0x790] ss:$8 sps:$4 sm:$0xff]  }
  0x66   :  { %v137_v26 = vadd.f32 %v136_v22, %v78_v16  ;;  %v4606_v16 = vld [vmem:[#allocation5 + $0x60] ss:$8 sps:$4 sm:$0xff]   ;;  %v4614_v22 = vld [vmem:[#allocation5 + $0x84] ss:$8 sps:$4 sm:$0xff]   ;;  %v5299_v2 = vld [vmem:[#allocation2 + $0xf0] sm:$0xff] }
  0x67   :  { %v167_v42 = vadd.f32 %v166_v39, %v107_v33  ;;  %3356 = vmatpush1.bf16.msra.mxu1 %v4588_v4  ;;  %v5300_v4 = vld [vmem:[#allocation2 + $0xf8] sm:$0xff] }
  0x68   :  { %v138_v30 = vadd.f32 %v137_v26, %v79_v20  ;;  %3357 = vmatprep.subr.bf16.mxu1 %v4590_v6  ;;  %3661 = vmatpush1.bf16.msra.mxu0 %v4601_v13  ;;  %v4612_v20 = vld [vmem:[#allocation5 + $0x70] ss:$8 sps:$4 sm:$0xff]   ;;  %v4620_v26 = vld [vmem:[#allocation5 + $0x94] ss:$8 sps:$4 sm:$0xff]   ;;  %v5301_v6 = vld [vmem:[#allocation2 + $0x48] sm:$0xff] }
  0x69   :  { %v168_v45 = vadd.f32 %v167_v42, %v108_v37  ;;  %3662 = vmatprep.subr.bf16.mxu0 %v4604_v15  ;;  %v5293_v42 = vld [vmem:[#allocation2 + $0x18] sm:$0xff] }
  0x6a   :  { %v139_v34 = vadd.f32 %v138_v30, %v80_v24  ;;  %v4618_v24 = vld [vmem:[#allocation5 + $0x80] ss:$8 sps:$4 sm:$0xff]   ;;  %v4626_v30 = vld [vmem:[#allocation5 + $0xa4] ss:$8 sps:$4 sm:$0xff]  }
  0x6b   :  { %v169_v47 = vadd.f32 %v168_v45, %v109_v40  ;;  %3358 = vmatpush1.bf16.msra.mxu1 %v4594_v8 }
  0x6c   :  { %v140_v38 = vadd.f32 %v139_v34, %v81_v28  ;;  %3359 = vmatprep.subr.bf16.mxu1 %v4596_v10  ;;  %3663 = vmatpush1.bf16.msra.mxu0 %v4607_v17  ;;  %v4624_v28 = vld [vmem:[#allocation5 + $0x90] ss:$8 sps:$4 sm:$0xff]   ;;  %v5290_v34 = vld [vmem:[#allocation2] sm:$0xff] }
  0x6d   :  { %v170_v49 = vadd.f32 %v169_v47, %v110_v43  ;;  %3664 = vmatprep.subr.bf16.mxu0 %v4610_v19  ;;  %v5302_v10 = vld [vmem:[#allocation2 + $0x50] sm:$0xff] }
  0x6e   :  { %v141_v41 = vadd.f32 %v140_v38, %v82_v32  ;;  %v4628_v32 = vld [vmem:[#allocation5 + $0x7a4] ss:$8 sps:$4 sm:$0xff]   ;;  %v5292_v38 = vld [vmem:[#allocation2 + $0x10] sm:$0xff] }
  0x6f   :  { %v171_v51 = vadd.f32 %v170_v49, %v111_v46  ;;  %3360 = vmatpush1.bf16.msra.mxu1 %v4600_v12  ;;  %v5295_v49 = vld [vmem:[#allocation2 + $0x28] sm:$0xff] }
  0x70   :  { %v142_v44 = vadd.f32 %v141_v41, %v83_v36  ;;  %3361 = vmatprep.subr.bf16.mxu1 %v4602_v14  ;;  %3665 = vmatpush1.bf16.msra.mxu0 %v4613_v21  ;;  %v5291_v36 = vld [vmem:[#allocation2 + $0x8] sm:$0xff]  ;;  %v5303_v14 = vld [vmem:[#allocation2 + $0x100] sm:$0xff] }
  0x71   :  { %v172_v52 = vadd.f32 %v171_v51, %v112_v48  ;;  %3666 = vmatprep.subr.bf16.mxu0 %v4616_v23 }
  0x72   :  { %143 = vadd.xlane.f32.xlu0 %v142_v44  ;;  %v5294_v44 = vld [vmem:[#allocation2 + $0x20] sm:$0xff] }
  0x73   :  { %v173_v53 = vadd.f32 %v172_v52, %v113_v50  ;;  %3362 = vmatpush1.bf16.msra.mxu1 %v4606_v16 }
  0x74   :  { %3363 = vmatprep.subr.bf16.mxu1 %v4608_v18  ;;  %3667 = vmatpush1.bf16.msra.mxu0 %v4619_v25  ;;  %v5304_v18 = vld [vmem:[#allocation2 + $0x58] sm:$0xff] }
  0x75   :  { %3668 = vmatprep.subr.bf16.mxu0 %v4622_v27 }
  0x76   :  { %174 = vadd.xlane.f32.xlu0 %v173_v53  ;;  %v5296_v53 = vld [vmem:[#allocation2 + $0x30] sm:$0xff] }
  0x77   :  { %3364 = vmatpush1.bf16.msra.mxu1 %v4612_v20 }
  0x78   :  { %3365 = vmatprep.subr.bf16.mxu1 %v4614_v22  ;;  %3669 = vmatpush1.bf16.msra.mxu0 %v4625_v29  ;;  %v5305_v22 = vld [vmem:[#allocation2 + $0x108] sm:$0xff] }
  0x79   :  { %3670 = vmatprep.subr.bf16.mxu0 %v4628_v32  ;;  %v5308_v32 = vld [vmem:[#allocation2 + $0x68] sm:$0xff] }
  0x7b   :  { %3366 = vmatpush1.bf16.msra.mxu1 %v4618_v24  ;;  %v5306_v24 = vld [vmem:[#allocation2 + $0x60] sm:$0xff] }
  0x7c   :  { %3367 = vmatprep.subr.bf16.mxu1 %v4620_v26 }
  0x7f   :  { %3368 = vmatpush1.bf16.msra.mxu1 %v4624_v28  ;;  %v5307_v28 = vld [vmem:[#allocation2 + $0x110] sm:$0xff] }
  0x80   :  { %3369 = vmatprep.subr.bf16.mxu1 %v4626_v30 }
  0xff   :  { %v144_v31 = vpop.xlane.xlu0 %143 }
 0x100   :  { %v5510_v33 = vmul.f32 0.00026041668, %v144_v31 }
 0x102   :  { %v5513_v35 = vsub.f32 %v5290_v34, %v5510_v33  ;;  %v5516_v37 = vsub.f32 %v5291_v36, %v5510_v33  ;;  %v5519_v39 = vsub.f32 %v5292_v38, %v5510_v33  ;;  %v5526_v43 = vsub.f32 %v5293_v42, %v5510_v33 }
 0x103   :  { %v5529_v45 = vsub.f32 %v5294_v44, %v5510_v33  ;;  %v175_v48 = vpop.xlane.xlu0 %174  ;;  %v5534_v50 = vsub.f32 %v5295_v49, %v5510_v33  ;;  %v5539_v54 = vsub.f32 %v5296_v53, %v5510_v33  ;;  %v5546_v59 = vsub.f32 %v5297_v58, %v5510_v33 }
 0x104   :  { %v239_v40 = vmul.f32 %v5513_v35, %v5513_v35  ;;  %v240_v41 = vmul.f32 %v5516_v37, %v5516_v37  ;;  %v241_v46 = vmul.f32 %v5519_v39, %v5519_v39  ;;  %v242_v51 = vmul.f32 %v5526_v43, %v5526_v43 }
 0x105   :  { %v243_v55 = vmul.f32 %v5529_v45, %v5529_v45  ;;  %v5543_v57 = vmul.f32 0.00026041668, %v175_v48  ;;  %v244_v60 = vmul.f32 %v5534_v50, %v5534_v50  ;;  %v5551_v63 = vsub.f32 %v5298_v62, %v5510_v33  ;;  %v5313_v62 = vld [vmem:[#allocation2 + $0x128] sm:$0xff] }
 0x106   :  { %v299_v47 = vadd.f32 %v240_v41, %v239_v40  ;;  %v245_v0 = vmul.f32 %v5539_v54, %v5539_v54  ;;  %v5562_v7 = vsub.f32 %v5301_v6, %v5510_v33  ;;  %v246_v8 = vmul.f32 %v5546_v59, %v5546_v59  ;;  %v5309_v40 = vld [vmem:[#allocation2 + $0x118] sm:$0xff] }
 0x107   :  { %v5556_v3 = vsub.f32 %v5299_v2, %v5543_v57  ;;  %v5559_v5 = vsub.f32 %v5300_v4, %v5543_v57  ;;  %v5567_v11 = vsub.f32 %v5302_v10, %v5510_v33  ;;  %v247_v12 = vmul.f32 %v5551_v63, %v5551_v63  ;;  %v5314_v4 = vld [vmem:[#allocation2 + $0x80] sm:$0xff]  ;;  %v5315_v10 = vld [vmem:[#allocation2 + $0x130] sm:$0xff] }
 0x108   :  { %v300_v52 = vadd.f32 %v299_v47, %v241_v46  ;;  %v5572_v15 = vsub.f32 %v5303_v14, %v5543_v57  ;;  %v5579_v19 = vsub.f32 %v5304_v18, %v5510_v33  ;;  %v248_v20 = vmul.f32 %v5562_v7, %v5562_v7  ;;  %v5310_v46 = vld [vmem:[#allocation2 + $0x70] sm:$0xff] }
 0x109   :  { %v269_v16 = vmul.f32 %v5556_v3, %v5556_v3  ;;  %v270_v17 = vmul.f32 %v5559_v5, %v5559_v5  ;;  %v5584_v23 = vsub.f32 %v5305_v22, %v5543_v57  ;;  %v5587_v25 = vsub.f32 %v5306_v24, %v5510_v33 }
 0x10a   :  { %v301_v56 = vadd.f32 %v300_v52, %v242_v51  ;;  %v249_v26 = vmul.f32 %v5567_v11, %v5567_v11  ;;  %v5592_v29 = vsub.f32 %v5307_v28, %v5543_v57  ;;  %v271_v30 = vmul.f32 %v5572_v15, %v5572_v15  ;;  %v5311_v51 = vld [vmem:[#allocation2 + $0x120] sm:$0xff] }
 0x10b   :  { %v330_v31 = vadd.f32 %v270_v17, %v269_v16  ;;  %v5597_v34 = vsub.f32 %v5308_v32, %v5510_v33  ;;  %v250_v36 = vmul.f32 %v5579_v19, %v5579_v19  ;;  %v5602_v41 = vsub.f32 %v5309_v40, %v5543_v57  ;;  %v5316_v16 = vld [vmem:[#allocation2 + $0x88] sm:$0xff]  ;;  %v5319_v32 = vld [vmem:[#allocation2 + $0x140] sm:$0xff] }
 0x10c   :  { %v302_v61 = vadd.f32 %v301_v56, %v243_v55  ;;  %v272_v42 = vmul.f32 %v5584_v23, %v5584_v23  ;;  %v5607_v47 = vsub.f32 %v5310_v46, %v5510_v33  ;;  %v251_v48 = vmul.f32 %v5587_v25, %v5587_v25  ;;  %v5312_v56 = vld [vmem:[#allocation2 + $0x78] sm:$0xff] }
 0x10d   :  { %v331_v44 = vadd.f32 %v330_v31, %v271_v30  ;;  %v5612_v52 = vsub.f32 %v5311_v51, %v5543_v57  ;;  %v273_v53 = vmul.f32 %v5592_v29, %v5592_v29  ;;  %v5617_v58 = vsub.f32 %v5312_v56, %v5510_v33  ;;  %v5322_v56 = vld [vmem:[#allocation2 + $0xa0] sm:$0xff] }
 0x10e   :  { %v303_v1 = vadd.f32 %v302_v61, %v244_v60  ;;  %v252_v60 = vmul.f32 %v5597_v34, %v5597_v34  ;;  %v5627_v6 = vsub.f32 %v5314_v4, %v5510_v33  ;;  %v5637_v17 = vsub.f32 %v5316_v16, %v5510_v33  ;;  %v5325_v16 = vld [vmem:[#allocation2 + $0x158] sm:$0xff] }
 0x10f   :  { %v332_v55 = vadd.f32 %v331_v44, %v272_v42  ;;  %v254_v18 = vmul.f32 %v5617_v58, %v5617_v58  ;;  %v5320_v42 = vld [vmem:[#allocation2 + $0x98] sm:$0xff] }
 0x110   :  { %v304_v9 = vadd.f32 %v303_v1, %v245_v0  ;;  %v5622_v0 = vsub.f32 %v5313_v62, %v5543_v57  ;;  %v274_v1 = vmul.f32 %v5602_v41, %v5602_v41  ;;  %v255_v30 = vmul.f32 %v5627_v6, %v5627_v6 }
 0x111   :  { %v333_v2 = vadd.f32 %v332_v55, %v273_v53  ;;  %v5657_v44 = vsub.f32 %v5320_v42, %v5510_v33  ;;  %v256_v46 = vmul.f32 %v5637_v17, %v5637_v17  ;;  %v5328_v42 = vld [vmem:[#allocation2 + $0xb8] sm:$0xff] }
 0x112   :  { %v305_v13 = vadd.f32 %v304_v9, %v246_v8  ;;  %v253_v8 = vmul.f32 %v5607_v47, %v5607_v47  ;;  %v276_v24 = vmul.f32 %v5622_v0, %v5622_v0 }
 0x113   :  { %v334_v14 = vadd.f32 %v333_v2, %v274_v1  ;;  %v5323_v1 = vld [vmem:[#allocation2 + $0x150] sm:$0xff] }
 0x114   :  { %v306_v21 = vadd.f32 %v305_v13, %v247_v12  ;;  %v5632_v12 = vsub.f32 %v5315_v10, %v5543_v57  ;;  %v275_v13 = vmul.f32 %v5612_v52, %v5612_v52  ;;  %v5672_v2 = vsub.f32 %v5323_v1, %v5543_v57 }
 0x116   :  { %v307_v27 = vadd.f32 %v306_v21, %v248_v20  ;;  %6188 = vst [vmem:[#allocation12_spill] sm:$0xff] %v5632_v12  ;;  %v5317_v21 = vld [vmem:[#allocation2 + $0x138] sm:$0xff]  ;;  %6192 = vst [vmem:[#allocation16_spill] sm:$0xff] %v5672_v2 }
 0x117   :  { %v5642_v22 = vsub.f32 %v5317_v21, %v5543_v57 }
 0x118   :  { %v308_v38 = vadd.f32 %v307_v27, %v249_v26  ;;  %v335_v26 = vadd.f32 %v334_v14, %v275_v13  ;;  %v5318_v27 = vld [vmem:[#allocation2 + $0x90] sm:$0xff]  ;;  %v258_v13 = vmul.f32 %v5657_v44, %v5657_v44 }
 0x119   :  { %6189 = vst [vmem:[#allocation13_spill] sm:$0xff] %v5642_v22  ;;  %v5647_v28 = vsub.f32 %v5318_v27, %v5510_v33  ;;  %v278_v53 = vmul.f32 %v5642_v22, %v5642_v22  ;;  %v5346_v22 = vld [vmem:[#allocation2 + $0x1c0] sm:$0xff] }
 0x11a   :  { %v309_v49 = vadd.f32 %v308_v38, %v250_v36  ;;  %v5652_v36 = vsub.f32 %v5319_v32, %v5543_v57  ;;  %v277_v38 = vmul.f32 %v5632_v12, %v5632_v12  ;;  %v336_v40 = vadd.f32 %v335_v26, %v276_v24  ;;  %v5326_v24 = vld [vmem:[#allocation2 + $0xb0] sm:$0xff] }
 0x11b   :  { %v5687_v26 = vsub.f32 %v5326_v24, %v5510_v33 }
 0x11c   :  { %v310_v61 = vadd.f32 %v309_v49, %v251_v48  ;;  %6190 = vst [vmem:[#allocation14_spill] sm:$0xff] %v5652_v36  ;;  %v5321_v49 = vld [vmem:[#allocation2 + $0x148] sm:$0xff]  ;;  %v337_v55 = vadd.f32 %v336_v40, %v277_v38  ;;  %v279_v4 = vmul.f32 %v5652_v36, %v5652_v36  ;;  %v281_v38 = vmul.f32 %v5672_v2, %v5672_v2 }
 0x11d   :  { %v5662_v51 = vsub.f32 %v5321_v49, %v5543_v57 }
 0x11e   :  { %v311_v9 = vadd.f32 %v310_v61, %v252_v60  ;;  %v5667_v60 = vsub.f32 %v5322_v56, %v5510_v33  ;;  %v257_v61 = vmul.f32 %v5647_v28, %v5647_v28 }
 0x11f   :  { %6191 = vst [vmem:[#allocation15_spill] sm:$0xff] %v5662_v51 }
 0x120   :  { %v312_v20 = vadd.f32 %v311_v9, %v253_v8  ;;  %v338_v8 = vadd.f32 %v337_v55, %v278_v53  ;;  %v5324_v9 = vld [vmem:[#allocation2 + $0xa8] sm:$0xff]  ;;  %v259_v27 = vmul.f32 %v5667_v60, %v5667_v60 }
 0x121   :  { %v5677_v10 = vsub.f32 %v5324_v9, %v5510_v33  ;;  %v5329_v53 = vld [vmem:[#allocation2 + $0x168] sm:$0xff]  ;;  %v5331_v9 = vld [vmem:[#allocation2 + $0x170] sm:$0xff] }
 0x122   :  { %v313_v31 = vadd.f32 %v312_v20, %v254_v18  ;;  %v5682_v18 = vsub.f32 %v5325_v16, %v5543_v57  ;;  %v280_v20 = vmul.f32 %v5662_v51, %v5662_v51  ;;  %v339_v21 = vadd.f32 %v338_v8, %v279_v4  ;;  %v5343_v51 = vld [vmem:[#allocation2 + $0x1a8] sm:$0xff] }
 0x123   :  { %v5702_v55 = vsub.f32 %v5329_v53, %v5543_v57  ;;  %v261_v4 = vmul.f32 %v5687_v26, %v5687_v26  ;;  %v5776_v12 = vsub.f32 %v5343_v51, %v5543_v57 }
 0x124   :  { %v314_v48 = vadd.f32 %v313_v31, %v255_v30  ;;  %6193 = vst [vmem:[#allocation17_spill] sm:$0xff] %v5682_v18  ;;  %v5327_v31 = vld [vmem:[#allocation2 + $0x160] sm:$0xff]  ;;  %v340_v40 = vadd.f32 %v339_v21, %v280_v20  ;;  %v282_v56 = vmul.f32 %v5682_v18, %v5682_v18  ;;  %v5332_v20 = vld [vmem:[#allocation2 + $0xc8] sm:$0xff] }
 0x125   :  { %v5692_v32 = vsub.f32 %v5327_v31, %v5543_v57  ;;  %v5717_v21 = vsub.f32 %v5332_v20, %v5510_v33  ;;  %v5337_v20 = vld [vmem:[#allocation2 + $0x188] sm:$0xff]  ;;  %v292_v51 = vmul.f32 %v5776_v12, %v5776_v12 }
 0x126   :  { %v315_v62 = vadd.f32 %v314_v48, %v256_v46  ;;  %v5697_v46 = vsub.f32 %v5328_v42, %v5510_v33  ;;  %v260_v48 = vmul.f32 %v5677_v10, %v5677_v10  ;;  %v5334_v42 = vld [vmem:[#allocation2 + $0xd0] sm:$0xff] }
 0x128   :  { %v316_v14 = vadd.f32 %v315_v62, %v257_v61  ;;  %v341_v61 = vadd.f32 %v340_v40, %v281_v38  ;;  %v5330_v62 = vld [vmem:[#allocation2 + $0xc0] sm:$0xff]  ;;  %v262_v24 = vmul.f32 %v5697_v46, %v5697_v46  ;;  %v284_v38 = vmul.f32 %v5702_v55, %v5702_v55 }
 0x129   :  { %v5707_v1 = vsub.f32 %v5330_v62, %v5510_v33 }
 0x12a   :  { %v317_v30 = vadd.f32 %v316_v14, %v258_v13  ;;  %v5712_v13 = vsub.f32 %v5331_v9, %v5543_v57  ;;  %v283_v14 = vmul.f32 %v5692_v32, %v5692_v32  ;;  %v342_v16 = vadd.f32 %v341_v61, %v282_v56  ;;  %v5335_v56 = vld [vmem:[#allocation2 + $0x180] sm:$0xff] }
 0x12b   :  { %v5732_v61 = vsub.f32 %v5335_v56, %v5543_v57 }
 0x12c   :  { %v318_v49 = vadd.f32 %v317_v30, %v259_v27  ;;  %v5333_v30 = vld [vmem:[#allocation2 + $0x178] sm:$0xff]  ;;  %v343_v40 = vadd.f32 %v342_v16, %v283_v14  ;;  %v285_v62 = vmul.f32 %v5712_v13, %v5712_v13  ;;  %v264_v14 = vmul.f32 %v5717_v21, %v5717_v21 }
 0x12d   :  { %v5722_v31 = vsub.f32 %v5333_v30, %v5543_v57  ;;  %v5742_v30 = vsub.f32 %v5337_v20, %v5543_v57  ;;  %v5340_v20 = vld [vmem:[#allocation2 + $0xe8] sm:$0xff] }
 0x12e   :  { %v319_v8 = vadd.f32 %v318_v49, %v260_v48  ;;  %v5727_v48 = vsub.f32 %v5334_v42, %v5510_v33  ;;  %v263_v49 = vmul.f32 %v5707_v1, %v5707_v1  ;;  %v5338_v42 = vld [vmem:[#allocation2 + $0xe0] sm:$0xff]  ;;  %v5757_v18 = vsub.f32 %v5340_v20, %v5510_v33 }
 0x12f   :  { %v5747_v56 = vsub.f32 %v5338_v42, %v5510_v33  ;;  %v5341_v42 = vld [vmem:[#allocation2 + $0x198] sm:$0xff] }
 0x130   :  { %v320_v27 = vadd.f32 %v319_v8, %v261_v4  ;;  %v344_v4 = vadd.f32 %v343_v40, %v284_v38  ;;  %v5336_v8 = vld [vmem:[#allocation2 + $0xd8] sm:$0xff]  ;;  %v265_v38 = vmul.f32 %v5727_v48, %v5727_v48  ;;  %v5762_v36 = vsub.f32 %v5341_v42, %v5543_v57 }
 0x131   :  { %v5737_v9 = vsub.f32 %v5336_v8, %v5510_v33  ;;  %6194 = vst [vmem:[#allocation18_spill] sm:$0xff] %v5747_v56  ;;  %v5339_v8 = vld [vmem:[#allocation2 + $0x190] sm:$0xff] }
 0x132   :  { %v321_v53 = vadd.f32 %v320_v27, %v262_v24  ;;  %v286_v24 = vmul.f32 %v5722_v31, %v5722_v31  ;;  %v345_v27 = vadd.f32 %v344_v4, %v285_v62  ;;  %v5752_v2 = vsub.f32 %v5339_v8, %v5543_v57 }
 0x133   :  { %v266_v62 = vmul.f32 %v5737_v9, %v5737_v9  ;;  %v267_v8 = vmul.f32 %v5747_v56, %v5747_v56  ;;  %v5345_v56 = vld [vmem:[#allocation2 + $0x1b8] sm:$0xff] }
 0x134   :  { %v322_v16 = vadd.f32 %v321_v53, %v263_v49  ;;  %v287_v49 = vmul.f32 %v5732_v61, %v5732_v61  ;;  %v346_v53 = vadd.f32 %v345_v27, %v286_v24  ;;  %v5342_v27 = vld [vmem:[#allocation2 + $0x1a0] sm:$0xff]  ;;  %v289_v20 = vmul.f32 %v5752_v2, %v5752_v2 }
 0x135   :  { %v5769_v33 = vsub.f32 %v5342_v27, %v5543_v57 }
 0x136   :  { %v323_v40 = vadd.f32 %v322_v16, %v264_v14  ;;  %v288_v14 = vmul.f32 %v5742_v30, %v5742_v30  ;;  %v347_v16 = vadd.f32 %v346_v53, %v287_v49  ;;  %v290_v49 = vmul.f32 %v5762_v36, %v5762_v36 }
 0x137   :  { %6195 = vst [vmem:[#allocation19_spill] sm:$0xff] %v5769_v33 }
 0x138   :  { %v324_v4 = vadd.f32 %v323_v40, %v265_v38  ;;  %v348_v38 = vadd.f32 %v347_v16, %v288_v14  ;;  %v268_v40 = vmul.f32 %v5757_v18, %v5757_v18  ;;  %v291_v14 = vmul.f32 %v5769_v33, %v5769_v33  ;;  %v4634_v33 = vld [vmem:[#allocation5 + $0x7b4] ss:$8 sps:$4 sm:$0xff]  }
 0x13a   :  { %v325_v24 = vadd.f32 %v324_v4, %v266_v62  ;;  %v349_v53 = vadd.f32 %v348_v38, %v289_v20  ;;  %v5344_v4 = vld [vmem:[#allocation2 + $0x1b0] sm:$0xff]  ;;  %v5791_v20 = vsub.f32 %v5346_v22, %v5543_v57 }
 0x13b   :  { %v5781_v27 = vsub.f32 %v5344_v4, %v5543_v57 }
 0x13c   :  { %v326_v42 = vadd.f32 %v325_v24, %v267_v8  ;;  %v350_v16 = vadd.f32 %v349_v53, %v290_v49  ;;  %v5786_v8 = vsub.f32 %v5345_v56, %v5543_v57  ;;  %6198 = vst [vmem:[#allocation22_spill] sm:$0xff] %v5791_v20  ;;  %v295_v22 = vmul.f32 %v5791_v20, %v5791_v20  ;;  %v4630_v20 = vld [vmem:[#allocation5 + $0xa0] ss:$8 sps:$4 sm:$0xff]  }
 0x13d   :  { %6196 = vst [vmem:[#allocation20_spill] sm:$0xff] %v5781_v27  ;;  %v293_v38 = vmul.f32 %v5781_v27, %v5781_v27  ;;  %3370 = vmatpush1.bf16.msra.mxu1 %v4630_v20  ;;  %v4650_v20 = vld [vmem:[#allocation5 + $0xe4] ss:$8 sps:$4 sm:$0xff]  }
 0x13e   :  { %v327_v62 = vadd.f32 %v326_v42, %v268_v40  ;;  %6197 = vst [vmem:[#allocation21_spill] sm:$0xff] %v5786_v8  ;;  %v351_v24 = vadd.f32 %v350_v16, %v291_v14  ;;  %v5347_v42 = vld [vmem:[#allocation2 + $0x1c8] sm:$0xff]  ;;  %v294_v56 = vmul.f32 %v5786_v8, %v5786_v8  ;;  %v5349_v16 = vld [vmem:[#allocation2 + $0x1d8] sm:$0xff] }
 0x13f   :  { %v5796_v49 = vsub.f32 %v5347_v42, %v5543_v57  ;;  %v5806_v27 = vsub.f32 %v5349_v16, %v5543_v57  ;;  %v4640_v16 = vld [vmem:[#allocation5 + $0x7c4] ss:$8 sps:$4 sm:$0xff]  }
 0x140   :  { %328 = vadd.xlane.f32.xlu1 %v327_v62  ;;  %v352_v40 = vadd.f32 %v351_v24, %v292_v51  ;;  %v5348_v62 = vld [vmem:[#allocation2 + $0x1d0] sm:$0xff] }
 0x141   :  { %v5801_v4 = vsub.f32 %v5348_v62, %v5543_v57  ;;  %v296_v51 = vmul.f32 %v5796_v49, %v5796_v49  ;;  %v4636_v57 = vld [vmem:[#allocation5 + $0xb0] ss:$8 sps:$4 sm:$0xff]  }
 0x142   :  { %v353_v53 = vadd.f32 %v352_v40, %v293_v38  ;;  %v298_v40 = vmul.f32 %v5806_v27, %v5806_v27 }
 0x143   :  { %6199 = vst [vmem:[#allocation23_spill] sm:$0xff] %v5801_v4  ;;  %v297_v42 = vmul.f32 %v5801_v4, %v5801_v4  ;;  %v4644_v4 = vld [vmem:[#allocation5 + $0xd4] ss:$8 sps:$4 sm:$0xff]  }
 0x144   :  { %v354_v14 = vadd.f32 %v353_v53, %v294_v56  ;;  %v4631_v56 = vld [vmem:[#allocation5 + $0x7a0] ss:$8 sps:$4 sm:$0xff]   ;;  %v4632_v53 = vld [vmem:[#allocation5 + $0xb4] ss:$8 sps:$4 sm:$0xff]  }
 0x145   :  { %3671 = vmatpush1.bf16.msra.mxu0 %v4631_v56  ;;  %3371 = vmatprep.subr.bf16.mxu1 %v4632_v53  ;;  %v4656_v56 = vld [vmem:[#allocation5 + $0xf4] ss:$8 sps:$4 sm:$0xff]  }
 0x146   :  { %v355_v24 = vadd.f32 %v354_v14, %v295_v22  ;;  %3672 = vmatprep.subr.bf16.mxu0 %v4634_v33  ;;  %v4637_v22 = vld [vmem:[#allocation5 + $0x7b0] ss:$8 sps:$4 sm:$0xff]   ;;  %3372 = vmatpush1.bf16.msra.mxu1 %v4636_v57  ;;  %v4638_v14 = vld [vmem:[#allocation5 + $0xc4] ss:$8 sps:$4 sm:$0xff]   ;;  %v4658_v53 = vld [vmem:[#allocation5 + $0x7f4] ss:$8 sps:$4 sm:$0xff]  }
 0x147   :  { %3373 = vmatprep.subr.bf16.mxu1 %v4638_v14  ;;  %v4652_v33 = vld [vmem:[#allocation5 + $0x7e4] ss:$8 sps:$4 sm:$0xff]   ;;  %v4660_v57 = vld [vmem:[#allocation5 + $0xf0] ss:$8 sps:$4 sm:$0xff]  }
 0x148   :  { %v356_v38 = vadd.f32 %v355_v24, %v296_v51  ;;  %v4642_v51 = vld [vmem:[#allocation5 + $0xc0] ss:$8 sps:$4 sm:$0xff]   ;;  %v4667_v14 = vld [vmem:[#allocation5 + $0x804] ss:$8 sps:$4 sm:$0xff]  }
 0x149   :  { %3673 = vmatpush1.bf16.msra.mxu0 %v4637_v22  ;;  %v4643_v24 = vld [vmem:[#allocation5 + $0x7c0] ss:$8 sps:$4 sm:$0xff]   ;;  %v4661_v22 = vld [vmem:[#allocation5 + $0x7f0] ss:$8 sps:$4 sm:$0xff]  }
 0x14a   :  { %v357_v62 = vadd.f32 %v356_v38, %v297_v42  ;;  %3674 = vmatprep.subr.bf16.mxu0 %v4640_v16  ;;  %3374 = vmatpush1.bf16.msra.mxu1 %v4642_v51  ;;  %v4648_v42 = vld [vmem:[#allocation5 + $0xd0] ss:$8 sps:$4 sm:$0xff]  }
 0x14b   :  { %v4649_v38 = vld [vmem:[#allocation5 + $0x7d0] ss:$8 sps:$4 sm:$0xff]   ;;  %3375 = vmatprep.subr.bf16.mxu1 %v4644_v4  ;;  %v4664_v4 = vld [vmem:[#allocation5 + $0x104] ss:$8 sps:$4 sm:$0xff]  }
 0x14c   :  { %v358_v8 = vadd.f32 %v357_v62, %v298_v40  ;;  %v4654_v40 = vld [vmem:[#allocation5 + $0xe0] ss:$8 sps:$4 sm:$0xff]  }
 0x14d   :  { %3675 = vmatpush1.bf16.msra.mxu0 %v4643_v24  ;;  %v4655_v62 = vld [vmem:[#allocation5 + $0x7e0] ss:$8 sps:$4 sm:$0xff]  }
 0x14e   :  { %359 = vadd.xlane.f32.xlu1 %v358_v8  ;;  %v4646_v8 = vld [vmem:[#allocation5 + $0x7d4] ss:$8 sps:$4 sm:$0xff]   ;;  %3376 = vmatpush1.bf16.msra.mxu1 %v4648_v42 }
 0x14f   :  { %3676 = vmatprep.subr.bf16.mxu0 %v4646_v8  ;;  %3377 = vmatprep.subr.bf16.mxu1 %v4650_v20 }
 0x151   :  { %3677 = vmatpush1.bf16.msra.mxu0 %v4649_v38 }
 0x152   :  { %3678 = vmatprep.subr.bf16.mxu0 %v4652_v33  ;;  %3378 = vmatpush1.bf16.msra.mxu1 %v4654_v40 }
 0x153   :  { %3379 = vmatprep.subr.bf16.mxu1 %v4656_v56 }
 0x155   :  { %3679 = vmatpush1.bf16.msra.mxu0 %v4655_v62 }
 0x156   :  { %3680 = vmatprep.subr.bf16.mxu0 %v4658_v53  ;;  %3380 = vmatpush1.bf16.msra.mxu1 %v4660_v57 }
 0x157   :  { %3392 = vmatprep.subr.bf16.mxu1 %v4664_v4 }
 0x159   :  { %3681 = vmatpush1.bf16.msra.mxu0 %v4661_v22 }
 0x15a   :  { %3693 = vmatprep.subr.bf16.mxu0 %v4667_v14  ;;  %v4662_v14 = vld [vmem:[#allocation5 + $0x100] ss:$8 sps:$4 sm:$0xff]  }
 0x1cd   :  { %v329_v16 = vpop.xlane.xlu1 %328 }
 0x1ce   :  { %v361_v51 = vmul.f32 0.00026041668, %v329_v16  ;;  %v4665_v16 = vld [vmem:[#allocation5 + $0x800] ss:$8 sps:$4 sm:$0xff]  }
 0x1d0   :  { %v363_v24 = vadd.f32 1e-05, %v361_v51 }
 0x1d2   :  { %5286 = vrsqrt.f32 %v363_v24 }
 0x1db   :  { %v360_v8 = vpop.xlane.xlu1 %359 }
 0x1dc   :  { %v362_v42 = vmul.f32 0.00026041668, %v360_v8  ;;  %v5814_v20 = vpop.eup %5286  ;;  %v4673_v8 = vld [vmem:[#allocation5 + $0x814] ss:$8 sps:$4 sm:$0xff]  }
 0x1dd   :  { %v368_v33 = vmul.f32 %v5814_v20, %v5516_v37  ;;  %v382_v40 = vmul.f32 %v5814_v20, %v5617_v58  ;;  %v367_v62 = vmul.f32 %v5814_v20, %v5513_v35  ;;  %v381_v56 = vmul.f32 %v5814_v20, %v5607_v47 }
 0x1de   :  { %v364_v38 = vadd.f32 1e-05, %v362_v42  ;;  %v5826_v53 = vmul.f32 %v5814_v20, %v5526_v43  ;;  %v5830_v57 = vmul.f32 %v5814_v20, %v5637_v17  ;;  %v5834_v37 = vmul.f32 %v5814_v20, %v5519_v39 }
 0x1df   :  { %v5838_v58 = vmul.f32 %v5814_v20, %v5627_v6  ;;  %v5842_v35 = vmul.f32 %v5814_v20, %v5534_v50  ;;  %v5846_v43 = vmul.f32 %v5814_v20, %v5657_v44  ;;  %v5850_v47 = vmul.f32 %v5814_v20, %v5529_v45 }
 0x1e0   :  { %5288 = vrsqrt.f32 %v364_v38  ;;  %v5854_v39 = vmul.f32 %v5814_v20, %v5647_v28  ;;  %v5858_v6 = vmul.f32 %v5814_v20, %v5546_v59  ;;  %v5862_v50 = vmul.f32 %v5814_v20, %v5677_v10 }
 0x1e1   :  { %v5866_v17 = vmul.f32 %v5814_v20, %v5539_v54  ;;  %v5870_v45 = vmul.f32 %v5814_v20, %v5667_v60  ;;  %v5874_v28 = vmul.f32 %v5814_v20, %v5562_v7  ;;  %v5878_v59 = vmul.f32 %v5814_v20, %v5697_v46 }
 0x1e2   :  { %v5882_v44 = vmul.f32 %v5814_v20, %v5551_v63  ;;  %v5886_v54 = vmul.f32 %v5814_v20, %v5687_v26  ;;  %v5890_v60 = vmul.f32 %v5814_v20, %v5579_v19  ;;  %v5894_v7 = vmul.f32 %v5814_v20, %v5717_v21 }
 0x1e3   :  { %v5898_v10 = vmul.f32 %v5814_v20, %v5567_v11  ;;  %v5902_v63 = vmul.f32 %v5814_v20, %v5707_v1  ;;  %v5906_v26 = vmul.f32 %v5814_v20, %v5597_v34  ;;  %v5912_v19 = vmul.f32 %v5814_v20, %v5737_v9 }
 0x1e4   :  { %v5916_v21 = vmul.f32 %v5814_v20, %v5587_v25  ;;  %v5920_v11 = vmul.f32 %v5814_v20, %v5727_v48  ;;  %v5924_v1 = vmul.f32 %v5814_v20, %v5757_v18 }
 0x1ea   :  { %v5908_v46 = vpop.eup %5288 }
 0x1eb   :  { %v398_v34 = vmul.f32 %v5908_v46, %v5559_v5  ;;  %v412_v22 = vmul.f32 %v5908_v46, %v5702_v55  ;;  %v397_v9 = vmul.f32 %v5908_v46, %v5556_v3  ;;  %v411_v25 = vmul.f32 %v5908_v46, %v5692_v32 }
 0x1ec   :  { %v400_v48 = vmul.f32 %v5908_v46, %v5584_v23  ;;  %v414_v4 = vmul.f32 %v5908_v46, %v5722_v31  ;;  %v5940_v18 = vmul.f32 %v5908_v46, %v5572_v15  ;;  %v5944_v5 = vmul.f32 %v5908_v46, %v5712_v13  ;;  %v4670_v13 = vld [vmem:[#allocation5 + $0x114] ss:$8 sps:$4 sm:$0xff]  }
 0x1ed   :  { %v428_v55 = vpack.c.bf16 %v398_v34, %v368_v33  ;;  %v442_v3 = vpack.c.bf16 %v412_v22, %v382_v40  ;;  %v427_v51 = vpack.c.bf16 %v397_v9, %v367_v62  ;;  %v441_v32 = vpack.c.bf16 %v411_v25, %v381_v56  ;;  %v4671_v56 = vld [vmem:[#allocation5 + $0x810] ss:$8 sps:$4 sm:$0xff]  }
 0x1ee   :  { %v430_v24 = vpack.c.bf16 %v400_v48, %v5826_v53  ;;  %v444_v23 = vpack.c.bf16 %v414_v4, %v5830_v57  ;;  %v429_v31 = vpack.c.bf16 %v5940_v18, %v5834_v37  ;;  %v443_v15 = vpack.c.bf16 %v5944_v5, %v5838_v58  ;;  %v4679_v57 = vld [vmem:[#allocation5 + $0x824] ss:$8 sps:$4 sm:$0xff]   ;;  %v6209_v22 = vld [vmem:[#allocation22_spill] sm:$0xff]  ;;  %v4689_v53 = vld [vmem:[#allocation5 + $0x840] ss:$8 sps:$4 sm:$0xff]  }
 0x1ef   :  { %3381 = vmatprep.mubr.bf16.mxu1 %v428_v55  ;;  %3682 = vmatprep.mubr.bf16.mxu0 %v442_v3  ;;  %v5954_v42 = vmul.f32 %v5908_v46, %v5602_v41  ;;  %v5958_v38 = vmul.f32 %v5908_v46, %v5742_v30  ;;  %v5962_v33 = vmul.f32 %v5908_v46, %v5592_v29  ;;  %v4668_v30 = vld [vmem:[#allocation5 + $0x110] ss:$8 sps:$4 sm:$0xff]   ;;  %v4697_v29 = vld [vmem:[#allocation5 + $0x854] ss:$8 sps:$4 sm:$0xff]   ;;  %v4775_v37 = vld [vmem:[#allocation5 + $0x924] ss:$8 sps:$4 sm:$0xff]  }
 0x1f0   :  { %3382 = vmatmul.mubr.bf16.vlgmr.msra.gmra.mrb[0].mxu1 %v427_v51  ;;  %3683 = vmatmul.mubr.bf16.vlgmr.msra.gmra.mrb[0].mxu0 %v441_v32  ;;  %v5966_v40 = vmul.f32 %v5908_v46, %v5732_v61  ;;  %v5970_v62 = vmul.f32 %v5908_v46, %v5622_v0  ;;  %v5974_v41 = vmul.f32 %v5908_v46, %v5762_v36  ;;  %v4676_v0 = vld [vmem:[#allocation5 + $0x124] ss:$8 sps:$4 sm:$0xff]   ;;  %v6203_v51 = vld [vmem:[#allocation15_spill] sm:$0xff] }
 0x1f1   :  { %3393 = vmatpush1.bf16.msra.mxu1 %v4662_v14  ;;  %3694 = vmatpush1.bf16.msra.mxu0 %v4665_v16  ;;  %v5990_v9 = vmul.f32 %v5908_v46, %v5612_v52  ;;  %v5994_v25 = vmul.f32 %v5908_v46, %v5752_v2  ;;  %v6200_v48 = vld [vmem:[#allocation13_spill] sm:$0xff]  ;;  %v6002_v55 = vmul.f32 %v5908_v46, %v5776_v12  ;;  %v6201_v14 = vld [vmem:[#allocation12_spill] sm:$0xff]  ;;  %v6202_v16 = vld [vmem:[#allocation19_spill] sm:$0xff] }
 0x1f2   :  { %3424 = vmatprep.mubr.bf16.mxu1 %v430_v24  ;;  %3725 = vmatprep.mubr.bf16.mxu0 %v444_v23  ;;  %v5998_v4 = vmul.f32 %v5908_v46, %v6200_v48  ;;  %v6006_v3 = vmul.f32 %v5908_v46, %v6201_v14  ;;  %v6010_v52 = vmul.f32 %v5908_v46, %v6202_v16  ;;  %v4674_v32 = vld [vmem:[#allocation5 + $0x120] ss:$8 sps:$4 sm:$0xff]   ;;  %v4685_v48 = vld [vmem:[#allocation5 + $0x834] ss:$8 sps:$4 sm:$0xff]   ;;  %v4683_v34 = vld [vmem:[#allocation5 + $0x830] ss:$8 sps:$4 sm:$0xff]  }
 0x1f3   :  { %3394 = vmatprep.subr.bf16.mxu1 %v4670_v13  ;;  %3695 = vmatprep.subr.bf16.mxu0 %v4673_v8  ;;  %v6014_v2 = vmul.f32 %v5908_v46, %v6203_v51  ;;  %v4677_v24 = vld [vmem:[#allocation5 + $0x820] ss:$8 sps:$4 sm:$0xff]   ;;  %v4682_v8 = vld [vmem:[#allocation5 + $0x134] ss:$8 sps:$4 sm:$0xff]   ;;  %v4691_v61 = vld [vmem:[#allocation5 + $0x844] ss:$8 sps:$4 sm:$0xff]   ;;  %v6074_v36 = vmul.f32 %v5908_v46, %v5806_v27 }
 0x1f4   :  { %v6204_v51 = vld [vmem:[#allocation21_spill] sm:$0xff]  ;;  %v6206_v13 = vld [vmem:[#allocation20_spill] sm:$0xff]  ;;  %v4694_v27 = vld [vmem:[#allocation5 + $0x154] ss:$8 sps:$4 sm:$0xff]  }
 0x1f5   :  { %3395 = vmatpush1.bf16.msra.mxu1 %v4668_v30  ;;  %3696 = vmatpush1.bf16.msra.mxu0 %v4671_v56  ;;  %v6032_v23 = vmul.f32 %v5908_v46, %v6204_v51  ;;  %v6040_v14 = vmul.f32 %v5908_v46, %v6206_v13  ;;  %v6207_v12 = vld [vmem:[#allocation17_spill] sm:$0xff]  ;;  %v6048_v56 = vmul.f32 %v5908_v46, %v5796_v49  ;;  %v6208_v16 = vld [vmem:[#allocation16_spill] sm:$0xff]  ;;  %v6211_v49 = vld [vmem:[#allocation23_spill] sm:$0xff] }
 0x1f6   :  { %3396 = vmatprep.subr.bf16.mxu1 %v4676_v0  ;;  %3697 = vmatprep.subr.bf16.mxu0 %v4679_v57  ;;  %v6205_v0 = vld [vmem:[#allocation14_spill] sm:$0xff]  ;;  %v6044_v30 = vmul.f32 %v5908_v46, %v6207_v12  ;;  %v6052_v51 = vmul.f32 %v5908_v46, %v6208_v16  ;;  %v4688_v16 = vld [vmem:[#allocation5 + $0x144] ss:$8 sps:$4 sm:$0xff]   ;;  %v4770_v18 = vld [vmem:[#allocation5 + $0x220] ss:$8 sps:$4 sm:$0xff]  }
 0x1f7   :  { %v6036_v57 = vmul.f32 %v5908_v46, %v6205_v0  ;;  %v6056_v0 = vmul.f32 %v5908_v46, %v6209_v22  ;;  %v4680_v13 = vld [vmem:[#allocation5 + $0x130] ss:$8 sps:$4 sm:$0xff]   ;;  %v6082_v22 = vmul.f32 %v5908_v46, %v6211_v49  ;;  %v4700_v46 = vld [vmem:[#allocation5 + $0x164] ss:$8 sps:$4 sm:$0xff]   ;;  %v4701_v49 = vld [vmem:[#allocation5 + $0x860] ss:$8 sps:$4 sm:$0xff]  }
 0x1f8   :  { %v4709_v12 = vld [vmem:[#allocation5 + $0x874] ss:$8 sps:$4 sm:$0xff]   ;;  %v4773_v58 = vld [vmem:[#allocation5 + $0x920] ss:$8 sps:$4 sm:$0xff]  }
 0x1f9   :  { %3397 = vmatpush1.bf16.msra.mxu1 %v4674_v32  ;;  %3698 = vmatpush1.bf16.msra.mxu0 %v4677_v24  ;;  %v4686_v32 = vld [vmem:[#allocation5 + $0x140] ss:$8 sps:$4 sm:$0xff]   ;;  %v4706_v24 = vld [vmem:[#allocation5 + $0x174] ss:$8 sps:$4 sm:$0xff]  }
 0x1fa   :  { %3398 = vmatprep.subr.bf16.mxu1 %v4682_v8  ;;  %3699 = vmatprep.subr.bf16.mxu0 %v4685_v48  ;;  %v6210_v8 = vld [vmem:[#allocation18_spill] sm:$0xff] }
 0x1fb   :  { %v6078_v48 = vmul.f32 %v5814_v20, %v6210_v8  ;;  %v4692_v20 = vld [vmem:[#allocation5 + $0x150] ss:$8 sps:$4 sm:$0xff]   ;;  %v4778_v5 = vld [vmem:[#allocation5 + $0x234] ss:$8 sps:$4 sm:$0xff]  }
 0x1fc   :  { %v4695_v8 = vld [vmem:[#allocation5 + $0x850] ss:$8 sps:$4 sm:$0xff]  }
 0x1fd   :  { %3399 = vmatpush1.bf16.msra.mxu1 %v4680_v13  ;;  %3700 = vmatpush1.bf16.msra.mxu0 %v4683_v34  ;;  %v4703_v34 = vld [vmem:[#allocation5 + $0x864] ss:$8 sps:$4 sm:$0xff]   ;;  %v4698_v13 = vld [vmem:[#allocation5 + $0x160] ss:$8 sps:$4 sm:$0xff]  }
 0x1fe   :  { %3400 = vmatprep.subr.bf16.mxu1 %v4688_v16  ;;  %3701 = vmatprep.subr.bf16.mxu0 %v4691_v61  ;;  %v4704_v61 = vld [vmem:[#allocation5 + $0x170] ss:$8 sps:$4 sm:$0xff]  }
 0x1ff   :  { %v4707_v16 = vld [vmem:[#allocation5 + $0x870] ss:$8 sps:$4 sm:$0xff]  }
 0x201   :  { %3401 = vmatpush1.bf16.msra.mxu1 %v4686_v32  ;;  %3702 = vmatpush1.bf16.msra.mxu0 %v4689_v53  ;;  %v4712_v53 = vld [vmem:[#allocation5 + $0x184] ss:$8 sps:$4 sm:$0xff]  }
 0x202   :  { %3402 = vmatprep.subr.bf16.mxu1 %v4694_v27  ;;  %3703 = vmatprep.subr.bf16.mxu0 %v4697_v29  ;;  %v4715_v32 = vld [vmem:[#allocation5 + $0x884] ss:$8 sps:$4 sm:$0xff]   ;;  %v4710_v29 = vld [vmem:[#allocation5 + $0x180] ss:$8 sps:$4 sm:$0xff]  }
 0x203   :  { %v4713_v27 = vld [vmem:[#allocation5 + $0x880] ss:$8 sps:$4 sm:$0xff]  }
 0x205   :  { %3403 = vmatpush1.bf16.msra.mxu1 %v4692_v20  ;;  %3704 = vmatpush1.bf16.msra.mxu0 %v4695_v8  ;;  %v4718_v20 = vld [vmem:[#allocation5 + $0x194] ss:$8 sps:$4 sm:$0xff]  }
 0x206   :  { %3404 = vmatprep.subr.bf16.mxu1 %v4700_v46  ;;  %3705 = vmatprep.subr.bf16.mxu0 %v4703_v34  ;;  %v4721_v8 = vld [vmem:[#allocation5 + $0x894] ss:$8 sps:$4 sm:$0xff]   ;;  %v4716_v46 = vld [vmem:[#allocation5 + $0x190] ss:$8 sps:$4 sm:$0xff]  }
 0x207   :  { %v4719_v34 = vld [vmem:[#allocation5 + $0x890] ss:$8 sps:$4 sm:$0xff]  }
 0x209   :  { %3405 = vmatpush1.bf16.msra.mxu1 %v4698_v13  ;;  %3706 = vmatpush1.bf16.msra.mxu0 %v4701_v49  ;;  %v4724_v13 = vld [vmem:[#allocation5 + $0x1a4] ss:$8 sps:$4 sm:$0xff]  }
 0x20a   :  { %3406 = vmatprep.subr.bf16.mxu1 %v4706_v24  ;;  %3707 = vmatprep.subr.bf16.mxu0 %v4709_v12  ;;  %v4727_v49 = vld [vmem:[#allocation5 + $0x8a4] ss:$8 sps:$4 sm:$0xff]   ;;  %v4722_v12 = vld [vmem:[#allocation5 + $0x1a0] ss:$8 sps:$4 sm:$0xff]  }
 0x20b   :  { %v4725_v24 = vld [vmem:[#allocation5 + $0x8a0] ss:$8 sps:$4 sm:$0xff]  }
 0x20d   :  { %3407 = vmatpush1.bf16.msra.mxu1 %v4704_v61  ;;  %3708 = vmatpush1.bf16.msra.mxu0 %v4707_v16  ;;  %v4730_v61 = vld [vmem:[#allocation5 + $0x1b4] ss:$8 sps:$4 sm:$0xff]  }
 0x20e   :  { %3408 = vmatprep.subr.bf16.mxu1 %v4712_v53  ;;  %3709 = vmatprep.subr.bf16.mxu0 %v4715_v32  ;;  %v4733_v16 = vld [vmem:[#allocation5 + $0x8b4] ss:$8 sps:$4 sm:$0xff]   ;;  %v4728_v53 = vld [vmem:[#allocation5 + $0x1b0] ss:$8 sps:$4 sm:$0xff]  }
 0x20f   :  { %v4731_v32 = vld [vmem:[#allocation5 + $0x8b0] ss:$8 sps:$4 sm:$0xff]  }
 0x211   :  { %3409 = vmatpush1.bf16.msra.mxu1 %v4710_v29  ;;  %3710 = vmatpush1.bf16.msra.mxu0 %v4713_v27  ;;  %v4736_v29 = vld [vmem:[#allocation5 + $0x1c4] ss:$8 sps:$4 sm:$0xff]  }
 0x212   :  { %3410 = vmatprep.subr.bf16.mxu1 %v4718_v20  ;;  %3711 = vmatprep.subr.bf16.mxu0 %v4721_v8  ;;  %v4739_v27 = vld [vmem:[#allocation5 + $0x8c4] ss:$8 sps:$4 sm:$0xff]   ;;  %v4734_v20 = vld [vmem:[#allocation5 + $0x1c0] ss:$8 sps:$4 sm:$0xff]  }
 0x213   :  { %v4737_v8 = vld [vmem:[#allocation5 + $0x8c0] ss:$8 sps:$4 sm:$0xff]  }
 0x215   :  { %3411 = vmatpush1.bf16.msra.mxu1 %v4716_v46  ;;  %3712 = vmatpush1.bf16.msra.mxu0 %v4719_v34  ;;  %v4742_v46 = vld [vmem:[#allocation5 + $0x1d4] ss:$8 sps:$4 sm:$0xff]  }
 0x216   :  { %3412 = vmatprep.subr.bf16.mxu1 %v4724_v13  ;;  %3713 = vmatprep.subr.bf16.mxu0 %v4727_v49  ;;  %v4745_v34 = vld [vmem:[#allocation5 + $0x8d4] ss:$8 sps:$4 sm:$0xff]   ;;  %v4740_v13 = vld [vmem:[#allocation5 + $0x1d0] ss:$8 sps:$4 sm:$0xff]  }
 0x217   :  { %v4743_v49 = vld [vmem:[#allocation5 + $0x8d0] ss:$8 sps:$4 sm:$0xff]  }
 0x219   :  { %3413 = vmatpush1.bf16.msra.mxu1 %v4722_v12  ;;  %3714 = vmatpush1.bf16.msra.mxu0 %v4725_v24  ;;  %v4748_v12 = vld [vmem:[#allocation5 + $0x1e4] ss:$8 sps:$4 sm:$0xff]  }
 0x21a   :  { %3414 = vmatprep.subr.bf16.mxu1 %v4730_v61  ;;  %3715 = vmatprep.subr.bf16.mxu0 %v4733_v16  ;;  %v4751_v24 = vld [vmem:[#allocation5 + $0x8e4] ss:$8 sps:$4 sm:$0xff]   ;;  %v4746_v61 = vld [vmem:[#allocation5 + $0x1e0] ss:$8 sps:$4 sm:$0xff]  }
 0x21b   :  { %v4749_v16 = vld [vmem:[#allocation5 + $0x8e0] ss:$8 sps:$4 sm:$0xff]  }
 0x21d   :  { %3415 = vmatpush1.bf16.msra.mxu1 %v4728_v53  ;;  %3716 = vmatpush1.bf16.msra.mxu0 %v4731_v32  ;;  %v4754_v53 = vld [vmem:[#allocation5 + $0x1f4] ss:$8 sps:$4 sm:$0xff]  }
 0x21e   :  { %3416 = vmatprep.subr.bf16.mxu1 %v4736_v29  ;;  %3717 = vmatprep.subr.bf16.mxu0 %v4739_v27  ;;  %v4757_v32 = vld [vmem:[#allocation5 + $0x8f4] ss:$8 sps:$4 sm:$0xff]   ;;  %v4752_v29 = vld [vmem:[#allocation5 + $0x1f0] ss:$8 sps:$4 sm:$0xff]  }
 0x21f   :  { %v4755_v27 = vld [vmem:[#allocation5 + $0x8f0] ss:$8 sps:$4 sm:$0xff]  }
 0x221   :  { %3417 = vmatpush1.bf16.msra.mxu1 %v4734_v20  ;;  %3718 = vmatpush1.bf16.msra.mxu0 %v4737_v8  ;;  %v4760_v20 = vld [vmem:[#allocation5 + $0x204] ss:$8 sps:$4 sm:$0xff]  }
 0x222   :  { %3418 = vmatprep.subr.bf16.mxu1 %v4742_v46  ;;  %3719 = vmatprep.subr.bf16.mxu0 %v4745_v34  ;;  %v4763_v8 = vld [vmem:[#allocation5 + $0x904] ss:$8 sps:$4 sm:$0xff]   ;;  %v4758_v46 = vld [vmem:[#allocation5 + $0x200] ss:$8 sps:$4 sm:$0xff]  }
 0x223   :  { %v4761_v34 = vld [vmem:[#allocation5 + $0x900] ss:$8 sps:$4 sm:$0xff]  }
 0x225   :  { %3419 = vmatpush1.bf16.msra.mxu1 %v4740_v13  ;;  %3720 = vmatpush1.bf16.msra.mxu0 %v4743_v49  ;;  %v4766_v13 = vld [vmem:[#allocation5 + $0x214] ss:$8 sps:$4 sm:$0xff]  }
 0x226   :  { %3420 = vmatprep.subr.bf16.mxu1 %v4748_v12  ;;  %3721 = vmatprep.subr.bf16.mxu0 %v4751_v24  ;;  %v4769_v49 = vld [vmem:[#allocation5 + $0x914] ss:$8 sps:$4 sm:$0xff]   ;;  %v6212_v12 = vpack.c.bf16 %v5954_v42, %v5842_v35  ;;  %v4764_v24 = vld [vmem:[#allocation5 + $0x210] ss:$8 sps:$4 sm:$0xff]   ;;  %v4787_v42 = vld [vmem:[#allocation5 + $0x944] ss:$8 sps:$4 sm:$0xff]  }
 0x227   :  { %v4781_v35 = vld [vmem:[#allocation5 + $0x934] ss:$8 sps:$4 sm:$0xff]  }
 0x229   :  { %3421 = vmatpush1.bf16.msra.mxu1 %v4746_v61  ;;  %3722 = vmatpush1.bf16.msra.mxu0 %v4749_v16  ;;  %v6213_v61 = vpack.c.bf16 %v5958_v38, %v5846_v43  ;;  %v4767_v16 = vld [vmem:[#allocation5 + $0x910] ss:$8 sps:$4 sm:$0xff]   ;;  %v4784_v43 = vld [vmem:[#allocation5 + $0x244] ss:$8 sps:$4 sm:$0xff]   ;;  %v4782_v38 = vld [vmem:[#allocation5 + $0x240] ss:$8 sps:$4 sm:$0xff]  }
 0x22a   :  { %3422 = vmatprep.subr.bf16.mxu1 %v4754_v53  ;;  %3723 = vmatprep.subr.bf16.mxu0 %v4757_v32  ;;  %v4772_v53 = vld [vmem:[#allocation5 + $0x224] ss:$8 sps:$4 sm:$0xff]   ;;  %v4785_v32 = vld [vmem:[#allocation5 + $0x940] ss:$8 sps:$4 sm:$0xff]  }
 0x22d   :  { %3423 = vmatpush1.bf16.msra.mxu1 %v4752_v29  ;;  %3724 = vmatpush1.bf16.msra.mxu0 %v4755_v27  ;;  %v4790_v29 = vld [vmem:[#allocation5 + $0x254] ss:$8 sps:$4 sm:$0xff]  }
 0x22e   :  { %3435 = vmatprep.subr.bf16.mxu1 %v4760_v20  ;;  %3736 = vmatprep.subr.bf16.mxu0 %v4763_v8  ;;  %v4793_v27 = vld [vmem:[#allocation5 + $0x954] ss:$8 sps:$4 sm:$0xff]   ;;  %v4788_v20 = vld [vmem:[#allocation5 + $0x250] ss:$8 sps:$4 sm:$0xff]  }
 0x22f   :  { %v4791_v8 = vld [vmem:[#allocation5 + $0x950] ss:$8 sps:$4 sm:$0xff]  }
 0x230   :  { %3425 = vmatmul.mubr.bf16.vlgmr.msra.gmra.mrb[0].mxu1 %v429_v31  ;;  %3726 = vmatmul.mubr.bf16.vlgmr.msra.gmra.mrb[0].mxu0 %v443_v15  ;;  %v4776_v31 = vld [vmem:[#allocation5 + $0x230] ss:$8 sps:$4 sm:$0xff]  }
 0x231   :  { %3436 = vmatpush1.bf16.msra.mxu1 %v4758_v46  ;;  %3467 = vmatprep.mubr.bf16.mxu1 %v6212_v12  ;;  %v4779_v15 = vld [vmem:[#allocation5 + $0x930] ss:$8 sps:$4 sm:$0xff]   ;;  %v4796_v46 = vld [vmem:[#allocation5 + $0x264] ss:$8 sps:$4 sm:$0xff]   ;;  %v4802_v12 = vld [vmem:[#allocation5 + $0x274] ss:$8 sps:$4 sm:$0xff]  }
 0x232   :  { %3737 = vmatpush1.bf16.msra.mxu0 %v4761_v34  ;;  %3768 = vmatprep.mubr.bf16.mxu0 %v6213_v61  ;;  %v4799_v34 = vld [vmem:[#allocation5 + $0x964] ss:$8 sps:$4 sm:$0xff]   ;;  %v4800_v61 = vld [vmem:[#allocation5 + $0x270] ss:$8 sps:$4 sm:$0xff]  }
 0x233   :  { %3437 = vmatprep.subr.bf16.mxu1 %v4766_v13  ;;  %3738 = vmatprep.subr.bf16.mxu0 %v4769_v49  ;;  %v4794_v13 = vld [vmem:[#allocation5 + $0x260] ss:$8 sps:$4 sm:$0xff]  }
 0x234   :  { %v4797_v49 = vld [vmem:[#allocation5 + $0x960] ss:$8 sps:$4 sm:$0xff]  }
 0x235   :  { %3438 = vmatpush1.bf16.msra.mxu1 %v4764_v24  ;;  %v4805_v24 = vld [vmem:[#allocation5 + $0x974] ss:$8 sps:$4 sm:$0xff]  }
 0x236   :  { %3739 = vmatpush1.bf16.msra.mxu0 %v4767_v16  ;;  %3439 = vmatprep.subr.bf16.mxu1 %v4772_v53  ;;  %v4803_v16 = vld [vmem:[#allocation5 + $0x970] ss:$8 sps:$4 sm:$0xff]   ;;  %v4808_v53 = vld [vmem:[#allocation5 + $0x284] ss:$8 sps:$4 sm:$0xff]  }
 0x237   :  { %3740 = vmatprep.subr.bf16.mxu0 %v4775_v37  ;;  %v4811_v37 = vld [vmem:[#allocation5 + $0x984] ss:$8 sps:$4 sm:$0xff]  }
 0x239   :  { %3440 = vmatpush1.bf16.msra.mxu1 %v4770_v18  ;;  %v4806_v18 = vld [vmem:[#allocation5 + $0x280] ss:$8 sps:$4 sm:$0xff]  }
 0x23a   :  { %3741 = vmatpush1.bf16.msra.mxu0 %v4773_v58  ;;  %3441 = vmatprep.subr.bf16.mxu1 %v4778_v5  ;;  %v4809_v58 = vld [vmem:[#allocation5 + $0x980] ss:$8 sps:$4 sm:$0xff]   ;;  %v4814_v5 = vld [vmem:[#allocation5 + $0x294] ss:$8 sps:$4 sm:$0xff]  }
 0x23b   :  { %3742 = vmatprep.subr.bf16.mxu0 %v4781_v35  ;;  %v4817_v35 = vld [vmem:[#allocation5 + $0x994] ss:$8 sps:$4 sm:$0xff]  }
 0x23d   :  { %3442 = vmatpush1.bf16.msra.mxu1 %v4776_v31  ;;  %v4812_v31 = vld [vmem:[#allocation5 + $0x290] ss:$8 sps:$4 sm:$0xff]  }
 0x23e   :  { %3743 = vmatpush1.bf16.msra.mxu0 %v4779_v15  ;;  %3443 = vmatprep.subr.bf16.mxu1 %v4784_v43  ;;  %v4815_v15 = vld [vmem:[#allocation5 + $0x990] ss:$8 sps:$4 sm:$0xff]   ;;  %v4820_v43 = vld [vmem:[#allocation5 + $0x2a4] ss:$8 sps:$4 sm:$0xff]  }
 0x23f   :  { %3744 = vmatprep.subr.bf16.mxu0 %v4787_v42  ;;  %v4823_v42 = vld [vmem:[#allocation5 + $0x9a4] ss:$8 sps:$4 sm:$0xff]  }
 0x241   :  { %3444 = vmatpush1.bf16.msra.mxu1 %v4782_v38  ;;  %v4818_v38 = vld [vmem:[#allocation5 + $0x2a0] ss:$8 sps:$4 sm:$0xff]  }
 0x242   :  { %3745 = vmatpush1.bf16.msra.mxu0 %v4785_v32  ;;  %3445 = vmatprep.subr.bf16.mxu1 %v4790_v29  ;;  %v4821_v32 = vld [vmem:[#allocation5 + $0x9a0] ss:$8 sps:$4 sm:$0xff]   ;;  %v4826_v29 = vld [vmem:[#allocation5 + $0x2b4] ss:$8 sps:$4 sm:$0xff]  }
 0x243   :  { %3746 = vmatprep.subr.bf16.mxu0 %v4793_v27  ;;  %v4829_v27 = vld [vmem:[#allocation5 + $0x9b4] ss:$8 sps:$4 sm:$0xff]  }
 0x245   :  { %3446 = vmatpush1.bf16.msra.mxu1 %v4788_v20  ;;  %v4824_v20 = vld [vmem:[#allocation5 + $0x2b0] ss:$8 sps:$4 sm:$0xff]  }
 0x246   :  { %3747 = vmatpush1.bf16.msra.mxu0 %v4791_v8  ;;  %3447 = vmatprep.subr.bf16.mxu1 %v4796_v46  ;;  %v4827_v8 = vld [vmem:[#allocation5 + $0x9b0] ss:$8 sps:$4 sm:$0xff]   ;;  %v4832_v46 = vld [vmem:[#allocation5 + $0x2c4] ss:$8 sps:$4 sm:$0xff]  }
 0x247   :  { %3748 = vmatprep.subr.bf16.mxu0 %v4799_v34  ;;  %v4835_v34 = vld [vmem:[#allocation5 + $0x9c4] ss:$8 sps:$4 sm:$0xff]  }
 0x249   :  { %3448 = vmatpush1.bf16.msra.mxu1 %v4794_v13  ;;  %v4830_v13 = vld [vmem:[#allocation5 + $0x2c0] ss:$8 sps:$4 sm:$0xff]  }
 0x24a   :  { %3749 = vmatpush1.bf16.msra.mxu0 %v4797_v49  ;;  %3449 = vmatprep.subr.bf16.mxu1 %v4802_v12  ;;  %v4833_v49 = vld [vmem:[#allocation5 + $0x9c0] ss:$8 sps:$4 sm:$0xff]   ;;  %v4838_v12 = vld [vmem:[#allocation5 + $0x2d4] ss:$8 sps:$4 sm:$0xff]  }
 0x24b   :  { %3750 = vmatprep.subr.bf16.mxu0 %v4805_v24  ;;  %v4841_v24 = vld [vmem:[#allocation5 + $0x9d4] ss:$8 sps:$4 sm:$0xff]  }
 0x24d   :  { %3450 = vmatpush1.bf16.msra.mxu1 %v4800_v61  ;;  %v4836_v61 = vld [vmem:[#allocation5 + $0x2d0] ss:$8 sps:$4 sm:$0xff]  }
 0x24e   :  { %3751 = vmatpush1.bf16.msra.mxu0 %v4803_v16  ;;  %3451 = vmatprep.subr.bf16.mxu1 %v4808_v53  ;;  %v4839_v16 = vld [vmem:[#allocation5 + $0x9d0] ss:$8 sps:$4 sm:$0xff]   ;;  %v4844_v53 = vld [vmem:[#allocation5 + $0x2e4] ss:$8 sps:$4 sm:$0xff]  }
 0x24f   :  { %3752 = vmatprep.subr.bf16.mxu0 %v4811_v37  ;;  %v4847_v37 = vld [vmem:[#allocation5 + $0x9e4] ss:$8 sps:$4 sm:$0xff]  }
 0x251   :  { %3452 = vmatpush1.bf16.msra.mxu1 %v4806_v18  ;;  %v4842_v18 = vld [vmem:[#allocation5 + $0x2e0] ss:$8 sps:$4 sm:$0xff]  }
 0x252   :  { %3753 = vmatpush1.bf16.msra.mxu0 %v4809_v58  ;;  %3453 = vmatprep.subr.bf16.mxu1 %v4814_v5  ;;  %v4845_v58 = vld [vmem:[#allocation5 + $0x9e0] ss:$8 sps:$4 sm:$0xff]   ;;  %v4850_v5 = vld [vmem:[#allocation5 + $0x2f4] ss:$8 sps:$4 sm:$0xff]  }
 0x253   :  { %3754 = vmatprep.subr.bf16.mxu0 %v4817_v35  ;;  %v4853_v35 = vld [vmem:[#allocation5 + $0x9f4] ss:$8 sps:$4 sm:$0xff]  }
 0x255   :  { %3454 = vmatpush1.bf16.msra.mxu1 %v4812_v31  ;;  %v4848_v31 = vld [vmem:[#allocation5 + $0x2f0] ss:$8 sps:$4 sm:$0xff]  }
 0x256   :  { %3755 = vmatpush1.bf16.msra.mxu0 %v4815_v15  ;;  %3455 = vmatprep.subr.bf16.mxu1 %v4820_v43  ;;  %v4851_v15 = vld [vmem:[#allocation5 + $0x9f0] ss:$8 sps:$4 sm:$0xff]   ;;  %v4856_v43 = vld [vmem:[#allocation5 + $0x304] ss:$8 sps:$4 sm:$0xff]  }
 0x257   :  { %3756 = vmatprep.subr.bf16.mxu0 %v4823_v42  ;;  %v4859_v42 = vld [vmem:[#allocation5 + $0xa04] ss:$8 sps:$4 sm:$0xff]  }
 0x259   :  { %3456 = vmatpush1.bf16.msra.mxu1 %v4818_v38  ;;  %v4854_v38 = vld [vmem:[#allocation5 + $0x300] ss:$8 sps:$4 sm:$0xff]  }
 0x25a   :  { %3757 = vmatpush1.bf16.msra.mxu0 %v4821_v32  ;;  %3457 = vmatprep.subr.bf16.mxu1 %v4826_v29  ;;  %v4857_v32 = vld [vmem:[#allocation5 + $0xa00] ss:$8 sps:$4 sm:$0xff]   ;;  %v4862_v29 = vld [vmem:[#allocation5 + $0x314] ss:$8 sps:$4 sm:$0xff]  }
 0x25b   :  { %3758 = vmatprep.subr.bf16.mxu0 %v4829_v27  ;;  %v6214_v27 = vpack.c.bf16 %v5962_v33, %v5850_v47  ;;  %v4871_v47 = vld [vmem:[#allocation5 + $0xa24] ss:$8 sps:$4 sm:$0xff]   ;;  %v4866_v33 = vld [vmem:[#allocation5 + $0x320] ss:$8 sps:$4 sm:$0xff]  }
 0x25d   :  { %3458 = vmatpush1.bf16.msra.mxu1 %v4824_v20  ;;  %v4865_v20 = vld [vmem:[#allocation5 + $0xa14] ss:$8 sps:$4 sm:$0xff]  }
 0x25e   :  { %3759 = vmatpush1.bf16.msra.mxu0 %v4827_v8  ;;  %3459 = vmatprep.subr.bf16.mxu1 %v4832_v46  ;;  %v6215_v8 = vpack.c.bf16 %v5966_v40, %v5854_v39  ;;  %v4860_v46 = vld [vmem:[#allocation5 + $0x310] ss:$8 sps:$4 sm:$0xff]   ;;  %v4869_v39 = vld [vmem:[#allocation5 + $0xa20] ss:$8 sps:$4 sm:$0xff]   ;;  %v4874_v40 = vld [vmem:[#allocation5 + $0x334] ss:$8 sps:$4 sm:$0xff]  }
 0x25f   :  { %3760 = vmatprep.subr.bf16.mxu0 %v4835_v34  ;;  %v6216_v34 = vpack.c.bf16 %v5970_v62, %v5858_v6  ;;  %v4872_v6 = vld [vmem:[#allocation5 + $0x330] ss:$8 sps:$4 sm:$0xff]  }
 0x260   :  { %v4875_v62 = vld [vmem:[#allocation5 + $0xa30] ss:$8 sps:$4 sm:$0xff]  }
 0x261   :  { %3460 = vmatpush1.bf16.msra.mxu1 %v4830_v13  ;;  %v4863_v13 = vld [vmem:[#allocation5 + $0xa10] ss:$8 sps:$4 sm:$0xff]  }
 0x262   :  { %3761 = vmatpush1.bf16.msra.mxu0 %v4833_v49  ;;  %3461 = vmatprep.subr.bf16.mxu1 %v4838_v12  ;;  %v4868_v49 = vld [vmem:[#allocation5 + $0x324] ss:$8 sps:$4 sm:$0xff]   ;;  %v6217_v12 = vpack.c.bf16 %v5974_v41, %v5862_v50  ;;  %v4878_v41 = vld [vmem:[#allocation5 + $0x340] ss:$8 sps:$4 sm:$0xff]  }
 0x263   :  { %3762 = vmatprep.subr.bf16.mxu0 %v4841_v24  ;;  %v4877_v24 = vld [vmem:[#allocation5 + $0xa34] ss:$8 sps:$4 sm:$0xff]   ;;  %v4883_v50 = vld [vmem:[#allocation5 + $0xa44] ss:$8 sps:$4 sm:$0xff]  }
 0x265   :  { %3462 = vmatpush1.bf16.msra.mxu1 %v4836_v61  ;;  %v4880_v61 = vld [vmem:[#allocation5 + $0x344] ss:$8 sps:$4 sm:$0xff]  }
 0x266   :  { %3763 = vmatpush1.bf16.msra.mxu0 %v4839_v16  ;;  %3463 = vmatprep.subr.bf16.mxu1 %v4844_v53  ;;  %v4881_v16 = vld [vmem:[#allocation5 + $0xa40] ss:$8 sps:$4 sm:$0xff]   ;;  %v4886_v53 = vld [vmem:[#allocation5 + $0x354] ss:$8 sps:$4 sm:$0xff]  }
 0x267   :  { %3764 = vmatprep.subr.bf16.mxu0 %v4847_v37  ;;  %v4889_v37 = vld [vmem:[#allocation5 + $0xa54] ss:$8 sps:$4 sm:$0xff]  }
 0x269   :  { %3464 = vmatpush1.bf16.msra.mxu1 %v4842_v18  ;;  %v4884_v18 = vld [vmem:[#allocation5 + $0x350] ss:$8 sps:$4 sm:$0xff]  }
 0x26a   :  { %3765 = vmatpush1.bf16.msra.mxu0 %v4845_v58  ;;  %3465 = vmatprep.subr.bf16.mxu1 %v4850_v5  ;;  %v4887_v58 = vld [vmem:[#allocation5 + $0xa50] ss:$8 sps:$4 sm:$0xff]   ;;  %v4892_v5 = vld [vmem:[#allocation5 + $0x364] ss:$8 sps:$4 sm:$0xff]  }
 0x26b   :  { %3766 = vmatprep.subr.bf16.mxu0 %v4853_v35  ;;  %v4895_v35 = vld [vmem:[#allocation5 + $0xa64] ss:$8 sps:$4 sm:$0xff]  }
 0x26d   :  { %3466 = vmatpush1.bf16.msra.mxu1 %v4848_v31  ;;  %v4890_v31 = vld [vmem:[#allocation5 + $0x360] ss:$8 sps:$4 sm:$0xff]  }
 0x26e   :  { %3767 = vmatpush1.bf16.msra.mxu0 %v4851_v15  ;;  %3478 = vmatprep.subr.bf16.mxu1 %v4856_v43  ;;  %v4893_v15 = vld [vmem:[#allocation5 + $0xa60] ss:$8 sps:$4 sm:$0xff]   ;;  %v4898_v43 = vld [vmem:[#allocation5 + $0x374] ss:$8 sps:$4 sm:$0xff]  }
 0x26f   :  { %3779 = vmatprep.subr.bf16.mxu0 %v4859_v42  ;;  %v4901_v42 = vld [vmem:[#allocation5 + $0xa74] ss:$8 sps:$4 sm:$0xff]  }
 0x270   :  { %3468 = vmatmul.mubr.bf16.vlgmr.msra.gmra.mrb[0].mxu1 %v6214_v27  ;;  %v4907_v27 = vld [vmem:[#allocation5 + $0xa84] ss:$8 sps:$4 sm:$0xff]  }
 0x271   :  { %3769 = vmatmul.mubr.bf16.vlgmr.msra.gmra.mrb[0].mxu0 %v6215_v8  ;;  %3479 = vmatpush1.bf16.msra.mxu1 %v4854_v38  ;;  %v4896_v38 = vld [vmem:[#allocation5 + $0x370] ss:$8 sps:$4 sm:$0xff]   ;;  %v4905_v8 = vld [vmem:[#allocation5 + $0xa80] ss:$8 sps:$4 sm:$0xff]  }
 0x272   :  { %3510 = vmatprep.mubr.bf16.mxu1 %v6216_v34  ;;  %3780 = vmatpush1.bf16.msra.mxu0 %v4857_v32  ;;  %v4899_v32 = vld [vmem:[#allocation5 + $0xa70] ss:$8 sps:$4 sm:$0xff]   ;;  %v4913_v34 = vld [vmem:[#allocation5 + $0xa94] ss:$8 sps:$4 sm:$0xff]  }
 0x273   :  { %3811 = vmatprep.mubr.bf16.mxu0 %v6217_v12  ;;  %3480 = vmatprep.subr.bf16.mxu1 %v4862_v29  ;;  %v4904_v29 = vld [vmem:[#allocation5 + $0x384] ss:$8 sps:$4 sm:$0xff]  }
 0x274   :  { %3781 = vmatprep.subr.bf16.mxu0 %v4865_v20  ;;  %v4902_v20 = vld [vmem:[#allocation5 + $0x380] ss:$8 sps:$4 sm:$0xff]   ;;  %v4916_v12 = vld [vmem:[#allocation5 + $0x3a4] ss:$8 sps:$4 sm:$0xff]  }
 0x275   :  { %3481 = vmatpush1.bf16.msra.mxu1 %v4860_v46  ;;  %v4910_v46 = vld [vmem:[#allocation5 + $0x394] ss:$8 sps:$4 sm:$0xff]  }
 0x276   :  { %3782 = vmatpush1.bf16.msra.mxu0 %v4863_v13  ;;  %3482 = vmatprep.subr.bf16.mxu1 %v4868_v49  ;;  %v4908_v13 = vld [vmem:[#allocation5 + $0x390] ss:$8 sps:$4 sm:$0xff]  }
 0x277   :  { %3783 = vmatprep.subr.bf16.mxu0 %v4871_v47  ;;  %v4911_v49 = vld [vmem:[#allocation5 + $0xa90] ss:$8 sps:$4 sm:$0xff]   ;;  %v4919_v47 = vld [vmem:[#allocation5 + $0xaa4] ss:$8 sps:$4 sm:$0xff]  }
 0x279   :  { %3483 = vmatpush1.bf16.msra.mxu1 %v4866_v33  ;;  %v4914_v33 = vld [vmem:[#allocation5 + $0x3a0] ss:$8 sps:$4 sm:$0xff]  }
 0x27a   :  { %3784 = vmatpush1.bf16.msra.mxu0 %v4869_v39  ;;  %3484 = vmatprep.subr.bf16.mxu1 %v4874_v40  ;;  %v4917_v39 = vld [vmem:[#allocation5 + $0xaa0] ss:$8 sps:$4 sm:$0xff]   ;;  %v4922_v40 = vld [vmem:[#allocation5 + $0x3b4] ss:$8 sps:$4 sm:$0xff]  }
 0x27b   :  { %3785 = vmatprep.subr.bf16.mxu0 %v4877_v24  ;;  %v4925_v24 = vld [vmem:[#allocation5 + $0xab4] ss:$8 sps:$4 sm:$0xff]  }
 0x27d   :  { %3485 = vmatpush1.bf16.msra.mxu1 %v4872_v6  ;;  %v4920_v6 = vld [vmem:[#allocation5 + $0x3b0] ss:$8 sps:$4 sm:$0xff]  }
 0x27e   :  { %3786 = vmatpush1.bf16.msra.mxu0 %v4875_v62  ;;  %3486 = vmatprep.subr.bf16.mxu1 %v4880_v61  ;;  %v4923_v62 = vld [vmem:[#allocation5 + $0xab0] ss:$8 sps:$4 sm:$0xff]   ;;  %v4928_v61 = vld [vmem:[#allocation5 + $0x3c4] ss:$8 sps:$4 sm:$0xff]  }
 0x27f   :  { %3787 = vmatprep.subr.bf16.mxu0 %v4883_v50  ;;  %v4931_v50 = vld [vmem:[#allocation5 + $0xac4] ss:$8 sps:$4 sm:$0xff]  }
 0x281   :  { %3487 = vmatpush1.bf16.msra.mxu1 %v4878_v41  ;;  %v4926_v41 = vld [vmem:[#allocation5 + $0x3c0] ss:$8 sps:$4 sm:$0xff]  }
 0x282   :  { %3788 = vmatpush1.bf16.msra.mxu0 %v4881_v16  ;;  %3488 = vmatprep.subr.bf16.mxu1 %v4886_v53  ;;  %v4929_v16 = vld [vmem:[#allocation5 + $0xac0] ss:$8 sps:$4 sm:$0xff]   ;;  %v4934_v53 = vld [vmem:[#allocation5 + $0x3d4] ss:$8 sps:$4 sm:$0xff]  }
 0x283   :  { %3789 = vmatprep.subr.bf16.mxu0 %v4889_v37  ;;  %v4937_v37 = vld [vmem:[#allocation5 + $0xad4] ss:$8 sps:$4 sm:$0xff]  }
 0x285   :  { %3489 = vmatpush1.bf16.msra.mxu1 %v4884_v18  ;;  %v4932_v18 = vld [vmem:[#allocation5 + $0x3d0] ss:$8 sps:$4 sm:$0xff]  }
 0x286   :  { %3790 = vmatpush1.bf16.msra.mxu0 %v4887_v58  ;;  %3490 = vmatprep.subr.bf16.mxu1 %v4892_v5  ;;  %v4935_v58 = vld [vmem:[#allocation5 + $0xad0] ss:$8 sps:$4 sm:$0xff]   ;;  %v4940_v5 = vld [vmem:[#allocation5 + $0x3e4] ss:$8 sps:$4 sm:$0xff]  }
 0x287   :  { %3791 = vmatprep.subr.bf16.mxu0 %v4895_v35  ;;  %v4943_v35 = vld [vmem:[#allocation5 + $0xae4] ss:$8 sps:$4 sm:$0xff]  }
 0x289   :  { %3491 = vmatpush1.bf16.msra.mxu1 %v4890_v31  ;;  %v4938_v31 = vld [vmem:[#allocation5 + $0x3e0] ss:$8 sps:$4 sm:$0xff]  }
 0x28a   :  { %3792 = vmatpush1.bf16.msra.mxu0 %v4893_v15  ;;  %3492 = vmatprep.subr.bf16.mxu1 %v4898_v43  ;;  %v4941_v15 = vld [vmem:[#allocation5 + $0xae0] ss:$8 sps:$4 sm:$0xff]   ;;  %v4946_v43 = vld [vmem:[#allocation5 + $0x3f4] ss:$8 sps:$4 sm:$0xff]  }
 0x28b   :  { %3793 = vmatprep.subr.bf16.mxu0 %v4901_v42  ;;  %v4949_v42 = vld [vmem:[#allocation5 + $0xaf4] ss:$8 sps:$4 sm:$0xff]  }
 0x28d   :  { %3493 = vmatpush1.bf16.msra.mxu1 %v4896_v38  ;;  %v4944_v38 = vld [vmem:[#allocation5 + $0x3f0] ss:$8 sps:$4 sm:$0xff]  }
 0x28e   :  { %3794 = vmatpush1.bf16.msra.mxu0 %v4899_v32  ;;  %3494 = vmatprep.subr.bf16.mxu1 %v4904_v29  ;;  %v4947_v32 = vld [vmem:[#allocation5 + $0xaf0] ss:$8 sps:$4 sm:$0xff]   ;;  %v4952_v29 = vld [vmem:[#allocation5 + $0x404] ss:$8 sps:$4 sm:$0xff]  }
 0x28f   :  { %3795 = vmatprep.subr.bf16.mxu0 %v4907_v27  ;;  %v4955_v27 = vld [vmem:[#allocation5 + $0xb04] ss:$8 sps:$4 sm:$0xff]  }
 0x291   :  { %3495 = vmatpush1.bf16.msra.mxu1 %v4902_v20  ;;  %v4950_v20 = vld [vmem:[#allocation5 + $0x400] ss:$8 sps:$4 sm:$0xff]  }
 0x292   :  { %3796 = vmatpush1.bf16.msra.mxu0 %v4905_v8  ;;  %3496 = vmatprep.subr.bf16.mxu1 %v4910_v46  ;;  %v4953_v8 = vld [vmem:[#allocation5 + $0xb00] ss:$8 sps:$4 sm:$0xff]   ;;  %v4958_v46 = vld [vmem:[#allocation5 + $0x414] ss:$8 sps:$4 sm:$0xff]  }
 0x293   :  { %3797 = vmatprep.subr.bf16.mxu0 %v4913_v34  ;;  %v6218_v34 = vpack.c.bf16 %v5990_v9, %v5866_v17  ;;  %v4967_v17 = vld [vmem:[#allocation5 + $0xb24] ss:$8 sps:$4 sm:$0xff]   ;;  %v4962_v9 = vld [vmem:[#allocation5 + $0x420] ss:$8 sps:$4 sm:$0xff]  }
 0x295   :  { %3497 = vmatpush1.bf16.msra.mxu1 %v4908_v13  ;;  %v4961_v13 = vld [vmem:[#allocation5 + $0xb14] ss:$8 sps:$4 sm:$0xff]  }
 0x296   :  { %3798 = vmatpush1.bf16.msra.mxu0 %v4911_v49  ;;  %3498 = vmatprep.subr.bf16.mxu1 %v4916_v12  ;;  %v6219_v49 = vpack.c.bf16 %v5994_v25, %v5870_v45  ;;  %v4956_v12 = vld [vmem:[#allocation5 + $0x410] ss:$8 sps:$4 sm:$0xff]   ;;  %v4965_v45 = vld [vmem:[#allocation5 + $0xb20] ss:$8 sps:$4 sm:$0xff]   ;;  %v4970_v25 = vld [vmem:[#allocation5 + $0x434] ss:$8 sps:$4 sm:$0xff]  }
 0x297   :  { %3799 = vmatprep.subr.bf16.mxu0 %v4919_v47  ;;  %v6220_v47 = vpack.c.bf16 %v5998_v4, %v5874_v28  ;;  %v4968_v28 = vld [vmem:[#allocation5 + $0x430] ss:$8 sps:$4 sm:$0xff]  }
 0x298   :  { %v4971_v4 = vld [vmem:[#allocation5 + $0xb30] ss:$8 sps:$4 sm:$0xff]  }
 0x299   :  { %3499 = vmatpush1.bf16.msra.mxu1 %v4914_v33  ;;  %v4959_v33 = vld [vmem:[#allocation5 + $0xb10] ss:$8 sps:$4 sm:$0xff]  }
 0x29a   :  { %3800 = vmatpush1.bf16.msra.mxu0 %v4917_v39  ;;  %3500 = vmatprep.subr.bf16.mxu1 %v4922_v40  ;;  %v4964_v39 = vld [vmem:[#allocation5 + $0x424] ss:$8 sps:$4 sm:$0xff]   ;;  %v6221_v40 = vpack.c.bf16 %v6002_v55, %v5878_v59  ;;  %v4974_v55 = vld [vmem:[#allocation5 + $0x440] ss:$8 sps:$4 sm:$0xff]  }
 0x29b   :  { %3801 = vmatprep.subr.bf16.mxu0 %v4925_v24  ;;  %v4973_v24 = vld [vmem:[#allocation5 + $0xb34] ss:$8 sps:$4 sm:$0xff]   ;;  %v4979_v59 = vld [vmem:[#allocation5 + $0xb44] ss:$8 sps:$4 sm:$0xff]  }
 0x29d   :  { %3501 = vmatpush1.bf16.msra.mxu1 %v4920_v6  ;;  %v4976_v6 = vld [vmem:[#allocation5 + $0x444] ss:$8 sps:$4 sm:$0xff]  }
 0x29e   :  { %3802 = vmatpush1.bf16.msra.mxu0 %v4923_v62  ;;  %3502 = vmatprep.subr.bf16.mxu1 %v4928_v61  ;;  %v4977_v62 = vld [vmem:[#allocation5 + $0xb40] ss:$8 sps:$4 sm:$0xff]   ;;  %v4982_v61 = vld [vmem:[#allocation5 + $0x454] ss:$8 sps:$4 sm:$0xff]  }
 0x29f   :  { %3803 = vmatprep.subr.bf16.mxu0 %v4931_v50  ;;  %v4985_v50 = vld [vmem:[#allocation5 + $0xb54] ss:$8 sps:$4 sm:$0xff]  }
 0x2a1   :  { %3503 = vmatpush1.bf16.msra.mxu1 %v4926_v41  ;;  %v4980_v41 = vld [vmem:[#allocation5 + $0x450] ss:$8 sps:$4 sm:$0xff]  }
 0x2a2   :  { %3804 = vmatpush1.bf16.msra.mxu0 %v4929_v16  ;;  %3504 = vmatprep.subr.bf16.mxu1 %v4934_v53  ;;  %v4983_v16 = vld [vmem:[#allocation5 + $0xb50] ss:$8 sps:$4 sm:$0xff]   ;;  %v4988_v53 = vld [vmem:[#allocation5 + $0x464] ss:$8 sps:$4 sm:$0xff]  }
 0x2a3   :  { %3805 = vmatprep.subr.bf16.mxu0 %v4937_v37  ;;  %v4991_v37 = vld [vmem:[#allocation5 + $0xb64] ss:$8 sps:$4 sm:$0xff]  }
 0x2a5   :  { %3505 = vmatpush1.bf16.msra.mxu1 %v4932_v18  ;;  %v4986_v18 = vld [vmem:[#allocation5 + $0x460] ss:$8 sps:$4 sm:$0xff]  }
 0x2a6   :  { %3806 = vmatpush1.bf16.msra.mxu0 %v4935_v58  ;;  %3506 = vmatprep.subr.bf16.mxu1 %v4940_v5  ;;  %v4989_v58 = vld [vmem:[#allocation5 + $0xb60] ss:$8 sps:$4 sm:$0xff]   ;;  %v4994_v5 = vld [vmem:[#allocation5 + $0x474] ss:$8 sps:$4 sm:$0xff]  }
 0x2a7   :  { %3807 = vmatprep.subr.bf16.mxu0 %v4943_v35  ;;  %v4997_v35 = vld [vmem:[#allocation5 + $0xb74] ss:$8 sps:$4 sm:$0xff]  }
 0x2a9   :  { %3507 = vmatpush1.bf16.msra.mxu1 %v4938_v31  ;;  %v4992_v31 = vld [vmem:[#allocation5 + $0x470] ss:$8 sps:$4 sm:$0xff]  }
 0x2aa   :  { %3808 = vmatpush1.bf16.msra.mxu0 %v4941_v15  ;;  %3508 = vmatprep.subr.bf16.mxu1 %v4946_v43  ;;  %v4995_v15 = vld [vmem:[#allocation5 + $0xb70] ss:$8 sps:$4 sm:$0xff]   ;;  %v5000_v43 = vld [vmem:[#allocation5 + $0x484] ss:$8 sps:$4 sm:$0xff]  }
 0x2ab   :  { %3809 = vmatprep.subr.bf16.mxu0 %v4949_v42  ;;  %v5003_v42 = vld [vmem:[#allocation5 + $0xb84] ss:$8 sps:$4 sm:$0xff]  }
 0x2ad   :  { %3509 = vmatpush1.bf16.msra.mxu1 %v4944_v38  ;;  %v4998_v38 = vld [vmem:[#allocation5 + $0x480] ss:$8 sps:$4 sm:$0xff]  }
 0x2ae   :  { %3810 = vmatpush1.bf16.msra.mxu0 %v4947_v32  ;;  %3521 = vmatprep.subr.bf16.mxu1 %v4952_v29  ;;  %v5001_v32 = vld [vmem:[#allocation5 + $0xb80] ss:$8 sps:$4 sm:$0xff]   ;;  %v5006_v29 = vld [vmem:[#allocation5 + $0x494] ss:$8 sps:$4 sm:$0xff]  }
 0x2af   :  { %3822 = vmatprep.subr.bf16.mxu0 %v4955_v27  ;;  %v5009_v27 = vld [vmem:[#allocation5 + $0xb94] ss:$8 sps:$4 sm:$0xff]  }
 0x2b0   :  { %3511 = vmatmul.mubr.bf16.vlgmr.msra.gmra.mrb[0].mxu1 %v6218_v34  ;;  %v5015_v34 = vld [vmem:[#allocation5 + $0xba4] ss:$8 sps:$4 sm:$0xff]  }
 0x2b1   :  { %3812 = vmatmul.mubr.bf16.vlgmr.msra.gmra.mrb[0].mxu0 %v6219_v49  ;;  %3522 = vmatpush1.bf16.msra.mxu1 %v4950_v20  ;;  %v5004_v20 = vld [vmem:[#allocation5 + $0x490] ss:$8 sps:$4 sm:$0xff]   ;;  %v5013_v49 = vld [vmem:[#allocation5 + $0xba0] ss:$8 sps:$4 sm:$0xff]  }
 0x2b2   :  { %3553 = vmatprep.mubr.bf16.mxu1 %v6220_v47  ;;  %3823 = vmatpush1.bf16.msra.mxu0 %v4953_v8  ;;  %v5007_v8 = vld [vmem:[#allocation5 + $0xb90] ss:$8 sps:$4 sm:$0xff]   ;;  %v5021_v47 = vld [vmem:[#allocation5 + $0xbb4] ss:$8 sps:$4 sm:$0xff]  }
 0x2b3   :  { %3854 = vmatprep.mubr.bf16.mxu0 %v6221_v40  ;;  %3523 = vmatprep.subr.bf16.mxu1 %v4958_v46  ;;  %v5012_v46 = vld [vmem:[#allocation5 + $0x4a4] ss:$8 sps:$4 sm:$0xff]  }
 0x2b4   :  { %3824 = vmatprep.subr.bf16.mxu0 %v4961_v13  ;;  %v5010_v13 = vld [vmem:[#allocation5 + $0x4a0] ss:$8 sps:$4 sm:$0xff]   ;;  %v5024_v40 = vld [vmem:[#allocation5 + $0x4c4] ss:$8 sps:$4 sm:$0xff]  }
 0x2b5   :  { %3524 = vmatpush1.bf16.msra.mxu1 %v4956_v12  ;;  %v5018_v12 = vld [vmem:[#allocation5 + $0x4b4] ss:$8 sps:$4 sm:$0xff]  }
 0x2b6   :  { %3825 = vmatpush1.bf16.msra.mxu0 %v4959_v33  ;;  %3525 = vmatprep.subr.bf16.mxu1 %v4964_v39  ;;  %v5016_v33 = vld [vmem:[#allocation5 + $0x4b0] ss:$8 sps:$4 sm:$0xff]  }
 0x2b7   :  { %3826 = vmatprep.subr.bf16.mxu0 %v4967_v17  ;;  %v5019_v39 = vld [vmem:[#allocation5 + $0xbb0] ss:$8 sps:$4 sm:$0xff]   ;;  %v5027_v17 = vld [vmem:[#allocation5 + $0xbc4] ss:$8 sps:$4 sm:$0xff]  }
 0x2b9   :  { %3526 = vmatpush1.bf16.msra.mxu1 %v4962_v9  ;;  %v5022_v9 = vld [vmem:[#allocation5 + $0x4c0] ss:$8 sps:$4 sm:$0xff]  }
 0x2ba   :  { %3827 = vmatpush1.bf16.msra.mxu0 %v4965_v45  ;;  %3527 = vmatprep.subr.bf16.mxu1 %v4970_v25  ;;  %v5025_v45 = vld [vmem:[#allocation5 + $0xbc0] ss:$8 sps:$4 sm:$0xff]   ;;  %v5030_v25 = vld [vmem:[#allocation5 + $0x4d4] ss:$8 sps:$4 sm:$0xff]  }
 0x2bb   :  { %3828 = vmatprep.subr.bf16.mxu0 %v4973_v24  ;;  %v5033_v24 = vld [vmem:[#allocation5 + $0xbd4] ss:$8 sps:$4 sm:$0xff]  }
 0x2bd   :  { %3528 = vmatpush1.bf16.msra.mxu1 %v4968_v28  ;;  %v5028_v28 = vld [vmem:[#allocation5 + $0x4d0] ss:$8 sps:$4 sm:$0xff]  }
 0x2be   :  { %3829 = vmatpush1.bf16.msra.mxu0 %v4971_v4  ;;  %3529 = vmatprep.subr.bf16.mxu1 %v4976_v6  ;;  %v5031_v4 = vld [vmem:[#allocation5 + $0xbd0] ss:$8 sps:$4 sm:$0xff]   ;;  %v5036_v6 = vld [vmem:[#allocation5 + $0x4e4] ss:$8 sps:$4 sm:$0xff]  }
 0x2bf   :  { %3830 = vmatprep.subr.bf16.mxu0 %v4979_v59  ;;  %v5039_v59 = vld [vmem:[#allocation5 + $0xbe4] ss:$8 sps:$4 sm:$0xff]  }
 0x2c1   :  { %3530 = vmatpush1.bf16.msra.mxu1 %v4974_v55  ;;  %v5034_v55 = vld [vmem:[#allocation5 + $0x4e0] ss:$8 sps:$4 sm:$0xff]  }
 0x2c2   :  { %3831 = vmatpush1.bf16.msra.mxu0 %v4977_v62  ;;  %3531 = vmatprep.subr.bf16.mxu1 %v4982_v61  ;;  %v5037_v62 = vld [vmem:[#allocation5 + $0xbe0] ss:$8 sps:$4 sm:$0xff]   ;;  %v5042_v61 = vld [vmem:[#allocation5 + $0x4f4] ss:$8 sps:$4 sm:$0xff]  }
 0x2c3   :  { %3832 = vmatprep.subr.bf16.mxu0 %v4985_v50  ;;  %v5045_v50 = vld [vmem:[#allocation5 + $0xbf4] ss:$8 sps:$4 sm:$0xff]  }
 0x2c5   :  { %3532 = vmatpush1.bf16.msra.mxu1 %v4980_v41  ;;  %v5040_v41 = vld [vmem:[#allocation5 + $0x4f0] ss:$8 sps:$4 sm:$0xff]  }
 0x2c6   :  { %3833 = vmatpush1.bf16.msra.mxu0 %v4983_v16  ;;  %3533 = vmatprep.subr.bf16.mxu1 %v4988_v53  ;;  %v5043_v16 = vld [vmem:[#allocation5 + $0xbf0] ss:$8 sps:$4 sm:$0xff]   ;;  %v5048_v53 = vld [vmem:[#allocation5 + $0x504] ss:$8 sps:$4 sm:$0xff]  }
 0x2c7   :  { %3834 = vmatprep.subr.bf16.mxu0 %v4991_v37  ;;  %v5051_v37 = vld [vmem:[#allocation5 + $0xc04] ss:$8 sps:$4 sm:$0xff]  }
 0x2c9   :  { %3534 = vmatpush1.bf16.msra.mxu1 %v4986_v18  ;;  %v5046_v18 = vld [vmem:[#allocation5 + $0x500] ss:$8 sps:$4 sm:$0xff]  }
 0x2ca   :  { %3835 = vmatpush1.bf16.msra.mxu0 %v4989_v58  ;;  %3535 = vmatprep.subr.bf16.mxu1 %v4994_v5  ;;  %v5049_v58 = vld [vmem:[#allocation5 + $0xc00] ss:$8 sps:$4 sm:$0xff]   ;;  %v5054_v5 = vld [vmem:[#allocation5 + $0x514] ss:$8 sps:$4 sm:$0xff]  }
 0x2cb   :  { %3836 = vmatprep.subr.bf16.mxu0 %v4997_v35  ;;  %v6222_v35 = vpack.c.bf16 %v6006_v3, %v5882_v44  ;;  %v5063_v44 = vld [vmem:[#allocation5 + $0xc24] ss:$8 sps:$4 sm:$0xff]   ;;  %v5058_v3 = vld [vmem:[#allocation5 + $0x520] ss:$8 sps:$4 sm:$0xff]  }
 0x2cd   :  { %3536 = vmatpush1.bf16.msra.mxu1 %v4992_v31  ;;  %v5057_v31 = vld [vmem:[#allocation5 + $0xc14] ss:$8 sps:$4 sm:$0xff]  }
 0x2ce   :  { %3837 = vmatpush1.bf16.msra.mxu0 %v4995_v15  ;;  %3537 = vmatprep.subr.bf16.mxu1 %v5000_v43  ;;  %v6223_v15 = vpack.c.bf16 %v6010_v52, %v5886_v54  ;;  %v5052_v43 = vld [vmem:[#allocation5 + $0x510] ss:$8 sps:$4 sm:$0xff]   ;;  %v5061_v54 = vld [vmem:[#allocation5 + $0xc20] ss:$8 sps:$4 sm:$0xff]   ;;  %v5066_v52 = vld [vmem:[#allocation5 + $0x534] ss:$8 sps:$4 sm:$0xff]  }
 0x2cf   :  { %3838 = vmatprep.subr.bf16.mxu0 %v5003_v42  ;;  %v6224_v42 = vpack.c.bf16 %v6014_v2, %v5890_v60  ;;  %v5064_v60 = vld [vmem:[#allocation5 + $0x530] ss:$8 sps:$4 sm:$0xff]  }
 0x2d0   :  { %v5067_v2 = vld [vmem:[#allocation5 + $0xc30] ss:$8 sps:$4 sm:$0xff]  }
 0x2d1   :  { %3538 = vmatpush1.bf16.msra.mxu1 %v4998_v38  ;;  %v5055_v38 = vld [vmem:[#allocation5 + $0xc10] ss:$8 sps:$4 sm:$0xff]  }
 0x2d2   :  { %3839 = vmatpush1.bf16.msra.mxu0 %v5001_v32  ;;  %3539 = vmatprep.subr.bf16.mxu1 %v5006_v29  ;;  %v5060_v32 = vld [vmem:[#allocation5 + $0x524] ss:$8 sps:$4 sm:$0xff]   ;;  %v6225_v29 = vpack.c.bf16 %v6032_v23, %v5894_v7  ;;  %v5070_v23 = vld [vmem:[#allocation5 + $0x540] ss:$8 sps:$4 sm:$0xff]  }
 0x2d3   :  { %3840 = vmatprep.subr.bf16.mxu0 %v5009_v27  ;;  %v5069_v27 = vld [vmem:[#allocation5 + $0xc34] ss:$8 sps:$4 sm:$0xff]   ;;  %v5075_v7 = vld [vmem:[#allocation5 + $0xc44] ss:$8 sps:$4 sm:$0xff]  }
 0x2d5   :  { %3540 = vmatpush1.bf16.msra.mxu1 %v5004_v20  ;;  %v5072_v20 = vld [vmem:[#allocation5 + $0x544] ss:$8 sps:$4 sm:$0xff]  }
 0x2d6   :  { %3841 = vmatpush1.bf16.msra.mxu0 %v5007_v8  ;;  %3541 = vmatprep.subr.bf16.mxu1 %v5012_v46  ;;  %v5073_v8 = vld [vmem:[#allocation5 + $0xc40] ss:$8 sps:$4 sm:$0xff]   ;;  %v5078_v46 = vld [vmem:[#allocation5 + $0x554] ss:$8 sps:$4 sm:$0xff]  }
 0x2d7   :  { %3842 = vmatprep.subr.bf16.mxu0 %v5015_v34  ;;  %v5081_v34 = vld [vmem:[#allocation5 + $0xc54] ss:$8 sps:$4 sm:$0xff]  }
 0x2d9   :  { %3542 = vmatpush1.bf16.msra.mxu1 %v5010_v13  ;;  %v5076_v13 = vld [vmem:[#allocation5 + $0x550] ss:$8 sps:$4 sm:$0xff]  }
 0x2da   :  { %3843 = vmatpush1.bf16.msra.mxu0 %v5013_v49  ;;  %3543 = vmatprep.subr.bf16.mxu1 %v5018_v12  ;;  %v5079_v49 = vld [vmem:[#allocation5 + $0xc50] ss:$8 sps:$4 sm:$0xff]   ;;  %v5084_v12 = vld [vmem:[#allocation5 + $0x564] ss:$8 sps:$4 sm:$0xff]  }
 0x2db   :  { %3844 = vmatprep.subr.bf16.mxu0 %v5021_v47  ;;  %v5087_v47 = vld [vmem:[#allocation5 + $0xc64] ss:$8 sps:$4 sm:$0xff]  }
 0x2dd   :  { %3544 = vmatpush1.bf16.msra.mxu1 %v5016_v33  ;;  %v5082_v33 = vld [vmem:[#allocation5 + $0x560] ss:$8 sps:$4 sm:$0xff]  }
 0x2de   :  { %3845 = vmatpush1.bf16.msra.mxu0 %v5019_v39  ;;  %3545 = vmatprep.subr.bf16.mxu1 %v5024_v40  ;;  %v5085_v39 = vld [vmem:[#allocation5 + $0xc60] ss:$8 sps:$4 sm:$0xff]   ;;  %v5090_v40 = vld [vmem:[#allocation5 + $0x574] ss:$8 sps:$4 sm:$0xff]  }
 0x2df   :  { %3846 = vmatprep.subr.bf16.mxu0 %v5027_v17  ;;  %v5093_v17 = vld [vmem:[#allocation5 + $0xc74] ss:$8 sps:$4 sm:$0xff]  }
 0x2e1   :  { %3546 = vmatpush1.bf16.msra.mxu1 %v5022_v9  ;;  %v5088_v9 = vld [vmem:[#allocation5 + $0x570] ss:$8 sps:$4 sm:$0xff]  }
 0x2e2   :  { %3847 = vmatpush1.bf16.msra.mxu0 %v5025_v45  ;;  %3547 = vmatprep.subr.bf16.mxu1 %v5030_v25  ;;  %v5091_v45 = vld [vmem:[#allocation5 + $0xc70] ss:$8 sps:$4 sm:$0xff]   ;;  %v5096_v25 = vld [vmem:[#allocation5 + $0x584] ss:$8 sps:$4 sm:$0xff]  }
 0x2e3   :  { %3848 = vmatprep.subr.bf16.mxu0 %v5033_v24  ;;  %v5099_v24 = vld [vmem:[#allocation5 + $0xc84] ss:$8 sps:$4 sm:$0xff]  }
 0x2e5   :  { %3548 = vmatpush1.bf16.msra.mxu1 %v5028_v28  ;;  %v5094_v28 = vld [vmem:[#allocation5 + $0x580] ss:$8 sps:$4 sm:$0xff]  }
 0x2e6   :  { %3849 = vmatpush1.bf16.msra.mxu0 %v5031_v4  ;;  %3549 = vmatprep.subr.bf16.mxu1 %v5036_v6  ;;  %v5097_v4 = vld [vmem:[#allocation5 + $0xc80] ss:$8 sps:$4 sm:$0xff]   ;;  %v5102_v6 = vld [vmem:[#allocation5 + $0x594] ss:$8 sps:$4 sm:$0xff]  }
 0x2e7   :  { %3850 = vmatprep.subr.bf16.mxu0 %v5039_v59  ;;  %v5105_v59 = vld [vmem:[#allocation5 + $0xc94] ss:$8 sps:$4 sm:$0xff]  }
 0x2e9   :  { %3550 = vmatpush1.bf16.msra.mxu1 %v5034_v55  ;;  %v5100_v55 = vld [vmem:[#allocation5 + $0x590] ss:$8 sps:$4 sm:$0xff]  }
 0x2ea   :  { %3851 = vmatpush1.bf16.msra.mxu0 %v5037_v62  ;;  %3551 = vmatprep.subr.bf16.mxu1 %v5042_v61  ;;  %v5103_v62 = vld [vmem:[#allocation5 + $0xc90] ss:$8 sps:$4 sm:$0xff]   ;;  %v5108_v61 = vld [vmem:[#allocation5 + $0x5a4] ss:$8 sps:$4 sm:$0xff]  }
 0x2eb   :  { %3852 = vmatprep.subr.bf16.mxu0 %v5045_v50  ;;  %v5111_v50 = vld [vmem:[#allocation5 + $0xca4] ss:$8 sps:$4 sm:$0xff]  }
 0x2ed   :  { %3552 = vmatpush1.bf16.msra.mxu1 %v5040_v41  ;;  %v5106_v41 = vld [vmem:[#allocation5 + $0x5a0] ss:$8 sps:$4 sm:$0xff]  }
 0x2ee   :  { %3853 = vmatpush1.bf16.msra.mxu0 %v5043_v16  ;;  %3564 = vmatprep.subr.bf16.mxu1 %v5048_v53  ;;  %v5109_v16 = vld [vmem:[#allocation5 + $0xca0] ss:$8 sps:$4 sm:$0xff]   ;;  %v5114_v53 = vld [vmem:[#allocation5 + $0x5b4] ss:$8 sps:$4 sm:$0xff]  }
 0x2ef   :  { %3865 = vmatprep.subr.bf16.mxu0 %v5051_v37  ;;  %v5117_v37 = vld [vmem:[#allocation5 + $0xcb4] ss:$8 sps:$4 sm:$0xff]  }
 0x2f0   :  { %3554 = vmatmul.mubr.bf16.vlgmr.msra.gmra.mrb[0].mxu1 %v6222_v35  ;;  %v5123_v35 = vld [vmem:[#allocation5 + $0xcc4] ss:$8 sps:$4 sm:$0xff]  }
 0x2f1   :  { %3855 = vmatmul.mubr.bf16.vlgmr.msra.gmra.mrb[0].mxu0 %v6223_v15  ;;  %3565 = vmatpush1.bf16.msra.mxu1 %v5046_v18  ;;  %v5112_v18 = vld [vmem:[#allocation5 + $0x5b0] ss:$8 sps:$4 sm:$0xff]   ;;  %v5121_v15 = vld [vmem:[#allocation5 + $0xcc0] ss:$8 sps:$4 sm:$0xff]  }
 0x2f2   :  { %3596 = vmatprep.mubr.bf16.mxu1 %v6224_v42  ;;  %3866 = vmatpush1.bf16.msra.mxu0 %v5049_v58  ;;  %v5115_v58 = vld [vmem:[#allocation5 + $0xcb0] ss:$8 sps:$4 sm:$0xff]   ;;  %v5129_v42 = vld [vmem:[#allocation5 + $0xcd4] ss:$8 sps:$4 sm:$0xff]  }
 0x2f3   :  { %3897 = vmatprep.mubr.bf16.mxu0 %v6225_v29  ;;  %3566 = vmatprep.subr.bf16.mxu1 %v5054_v5  ;;  %v5120_v5 = vld [vmem:[#allocation5 + $0x5c4] ss:$8 sps:$4 sm:$0xff]  }
 0x2f4   :  { %3867 = vmatprep.subr.bf16.mxu0 %v5057_v31  ;;  %v5118_v31 = vld [vmem:[#allocation5 + $0x5c0] ss:$8 sps:$4 sm:$0xff]   ;;  %v5132_v29 = vld [vmem:[#allocation5 + $0x5e4] ss:$8 sps:$4 sm:$0xff]  }
 0x2f5   :  { %3567 = vmatpush1.bf16.msra.mxu1 %v5052_v43  ;;  %v5126_v43 = vld [vmem:[#allocation5 + $0x5d4] ss:$8 sps:$4 sm:$0xff]  }
 0x2f6   :  { %3868 = vmatpush1.bf16.msra.mxu0 %v5055_v38  ;;  %3568 = vmatprep.subr.bf16.mxu1 %v5060_v32  ;;  %v5124_v38 = vld [vmem:[#allocation5 + $0x5d0] ss:$8 sps:$4 sm:$0xff]  }
 0x2f7   :  { %3869 = vmatprep.subr.bf16.mxu0 %v5063_v44  ;;  %v5127_v32 = vld [vmem:[#allocation5 + $0xcd0] ss:$8 sps:$4 sm:$0xff]   ;;  %v5135_v44 = vld [vmem:[#allocation5 + $0xce4] ss:$8 sps:$4 sm:$0xff]  }
 0x2f9   :  { %3569 = vmatpush1.bf16.msra.mxu1 %v5058_v3  ;;  %v5130_v3 = vld [vmem:[#allocation5 + $0x5e0] ss:$8 sps:$4 sm:$0xff]  }
 0x2fa   :  { %3870 = vmatpush1.bf16.msra.mxu0 %v5061_v54  ;;  %3570 = vmatprep.subr.bf16.mxu1 %v5066_v52  ;;  %v5133_v54 = vld [vmem:[#allocation5 + $0xce0] ss:$8 sps:$4 sm:$0xff]   ;;  %v5138_v52 = vld [vmem:[#allocation5 + $0x5f4] ss:$8 sps:$4 sm:$0xff]  }
 0x2fb   :  { %3871 = vmatprep.subr.bf16.mxu0 %v5069_v27  ;;  %v5141_v27 = vld [vmem:[#allocation5 + $0xcf4] ss:$8 sps:$4 sm:$0xff]  }
 0x2fd   :  { %3571 = vmatpush1.bf16.msra.mxu1 %v5064_v60  ;;  %v5136_v60 = vld [vmem:[#allocation5 + $0x5f0] ss:$8 sps:$4 sm:$0xff]  }
 0x2fe   :  { %3872 = vmatpush1.bf16.msra.mxu0 %v5067_v2  ;;  %3572 = vmatprep.subr.bf16.mxu1 %v5072_v20  ;;  %v5139_v2 = vld [vmem:[#allocation5 + $0xcf0] ss:$8 sps:$4 sm:$0xff]   ;;  %v5144_v20 = vld [vmem:[#allocation5 + $0x604] ss:$8 sps:$4 sm:$0xff]  }
 0x2ff   :  { %3873 = vmatprep.subr.bf16.mxu0 %v5075_v7  ;;  %v5147_v7 = vld [vmem:[#allocation5 + $0xd04] ss:$8 sps:$4 sm:$0xff]  }
 0x301   :  { %3573 = vmatpush1.bf16.msra.mxu1 %v5070_v23  ;;  %v5142_v23 = vld [vmem:[#allocation5 + $0x600] ss:$8 sps:$4 sm:$0xff]  }
 0x302   :  { %3874 = vmatpush1.bf16.msra.mxu0 %v5073_v8  ;;  %3574 = vmatprep.subr.bf16.mxu1 %v5078_v46  ;;  %v5145_v8 = vld [vmem:[#allocation5 + $0xd00] ss:$8 sps:$4 sm:$0xff]   ;;  %v5150_v46 = vld [vmem:[#allocation5 + $0x614] ss:$8 sps:$4 sm:$0xff]  }
 0x303   :  { %3875 = vmatprep.subr.bf16.mxu0 %v5081_v34  ;;  %v6226_v34 = vpack.c.bf16 %v6036_v57, %v5898_v10  ;;  %v5159_v10 = vld [vmem:[#allocation5 + $0xd24] ss:$8 sps:$4 sm:$0xff]   ;;  %v5154_v57 = vld [vmem:[#allocation5 + $0x620] ss:$8 sps:$4 sm:$0xff]  }
 0x305   :  { %3575 = vmatpush1.bf16.msra.mxu1 %v5076_v13  ;;  %v5153_v13 = vld [vmem:[#allocation5 + $0xd14] ss:$8 sps:$4 sm:$0xff]  }
 0x306   :  { %3876 = vmatpush1.bf16.msra.mxu0 %v5079_v49  ;;  %3576 = vmatprep.subr.bf16.mxu1 %v5084_v12  ;;  %v6227_v49 = vpack.c.bf16 %v6040_v14, %v5902_v63  ;;  %v5148_v12 = vld [vmem:[#allocation5 + $0x610] ss:$8 sps:$4 sm:$0xff]   ;;  %v5157_v63 = vld [vmem:[#allocation5 + $0xd20] ss:$8 sps:$4 sm:$0xff]   ;;  %v5162_v14 = vld [vmem:[#allocation5 + $0x634] ss:$8 sps:$4 sm:$0xff]  }
 0x307   :  { %3877 = vmatprep.subr.bf16.mxu0 %v5087_v47  ;;  %v6228_v47 = vpack.c.bf16 %v6044_v30, %v5906_v26  ;;  %v5160_v26 = vld [vmem:[#allocation5 + $0x630] ss:$8 sps:$4 sm:$0xff]  }
 0x308   :  { %v5163_v30 = vld [vmem:[#allocation5 + $0xd30] ss:$8 sps:$4 sm:$0xff]  }
 0x309   :  { %3577 = vmatpush1.bf16.msra.mxu1 %v5082_v33  ;;  %v5151_v33 = vld [vmem:[#allocation5 + $0xd10] ss:$8 sps:$4 sm:$0xff]  }
 0x30a   :  { %3878 = vmatpush1.bf16.msra.mxu0 %v5085_v39  ;;  %3578 = vmatprep.subr.bf16.mxu1 %v5090_v40  ;;  %v5156_v39 = vld [vmem:[#allocation5 + $0x624] ss:$8 sps:$4 sm:$0xff]   ;;  %v6229_v40 = vpack.c.bf16 %v6048_v56, %v5912_v19  ;;  %v5166_v56 = vld [vmem:[#allocation5 + $0x640] ss:$8 sps:$4 sm:$0xff]  }
 0x30b   :  { %3879 = vmatprep.subr.bf16.mxu0 %v5093_v17  ;;  %v5165_v17 = vld [vmem:[#allocation5 + $0xd34] ss:$8 sps:$4 sm:$0xff]   ;;  %v5171_v19 = vld [vmem:[#allocation5 + $0xd44] ss:$8 sps:$4 sm:$0xff]  }
 0x30d   :  { %3579 = vmatpush1.bf16.msra.mxu1 %v5088_v9  ;;  %v5168_v9 = vld [vmem:[#allocation5 + $0x644] ss:$8 sps:$4 sm:$0xff]  }
 0x30e   :  { %3880 = vmatpush1.bf16.msra.mxu0 %v5091_v45  ;;  %3580 = vmatprep.subr.bf16.mxu1 %v5096_v25  ;;  %v5169_v45 = vld [vmem:[#allocation5 + $0xd40] ss:$8 sps:$4 sm:$0xff]   ;;  %v5174_v25 = vld [vmem:[#allocation5 + $0x654] ss:$8 sps:$4 sm:$0xff]  }
 0x30f   :  { %3881 = vmatprep.subr.bf16.mxu0 %v5099_v24  ;;  %v5177_v24 = vld [vmem:[#allocation5 + $0xd54] ss:$8 sps:$4 sm:$0xff]  }
 0x311   :  { %3581 = vmatpush1.bf16.msra.mxu1 %v5094_v28  ;;  %v5172_v28 = vld [vmem:[#allocation5 + $0x650] ss:$8 sps:$4 sm:$0xff]  }
 0x312   :  { %3882 = vmatpush1.bf16.msra.mxu0 %v5097_v4  ;;  %3582 = vmatprep.subr.bf16.mxu1 %v5102_v6  ;;  %v5175_v4 = vld [vmem:[#allocation5 + $0xd50] ss:$8 sps:$4 sm:$0xff]   ;;  %v5180_v6 = vld [vmem:[#allocation5 + $0x664] ss:$8 sps:$4 sm:$0xff]  }
 0x313   :  { %3883 = vmatprep.subr.bf16.mxu0 %v5105_v59  ;;  %v5183_v59 = vld [vmem:[#allocation5 + $0xd64] ss:$8 sps:$4 sm:$0xff]  }
 0x315   :  { %3583 = vmatpush1.bf16.msra.mxu1 %v5100_v55  ;;  %v5178_v55 = vld [vmem:[#allocation5 + $0x660] ss:$8 sps:$4 sm:$0xff]  }
 0x316   :  { %3884 = vmatpush1.bf16.msra.mxu0 %v5103_v62  ;;  %3584 = vmatprep.subr.bf16.mxu1 %v5108_v61  ;;  %v5181_v62 = vld [vmem:[#allocation5 + $0xd60] ss:$8 sps:$4 sm:$0xff]   ;;  %v5186_v61 = vld [vmem:[#allocation5 + $0x674] ss:$8 sps:$4 sm:$0xff]  }
 0x317   :  { %3885 = vmatprep.subr.bf16.mxu0 %v5111_v50  ;;  %v5189_v50 = vld [vmem:[#allocation5 + $0xd74] ss:$8 sps:$4 sm:$0xff]  }
 0x319   :  { %3585 = vmatpush1.bf16.msra.mxu1 %v5106_v41  ;;  %v5184_v41 = vld [vmem:[#allocation5 + $0x670] ss:$8 sps:$4 sm:$0xff]  }
 0x31a   :  { %3886 = vmatpush1.bf16.msra.mxu0 %v5109_v16  ;;  %3586 = vmatprep.subr.bf16.mxu1 %v5114_v53  ;;  %v5187_v16 = vld [vmem:[#allocation5 + $0xd70] ss:$8 sps:$4 sm:$0xff]   ;;  %v5192_v53 = vld [vmem:[#allocation5 + $0x684] ss:$8 sps:$4 sm:$0xff]  }
 0x31b   :  { %3887 = vmatprep.subr.bf16.mxu0 %v5117_v37  ;;  %v5195_v37 = vld [vmem:[#allocation5 + $0xd84] ss:$8 sps:$4 sm:$0xff]  }
 0x31d   :  { %3587 = vmatpush1.bf16.msra.mxu1 %v5112_v18  ;;  %v5190_v18 = vld [vmem:[#allocation5 + $0x680] ss:$8 sps:$4 sm:$0xff]  }
 0x31e   :  { %3888 = vmatpush1.bf16.msra.mxu0 %v5115_v58  ;;  %3588 = vmatprep.subr.bf16.mxu1 %v5120_v5  ;;  %v5193_v58 = vld [vmem:[#allocation5 + $0xd80] ss:$8 sps:$4 sm:$0xff]   ;;  %v5198_v5 = vld [vmem:[#allocation5 + $0x694] ss:$8 sps:$4 sm:$0xff]  }
 0x31f   :  { %3889 = vmatprep.subr.bf16.mxu0 %v5123_v35  ;;  %v5201_v35 = vld [vmem:[#allocation5 + $0xd94] ss:$8 sps:$4 sm:$0xff]  }
 0x321   :  { %3589 = vmatpush1.bf16.msra.mxu1 %v5118_v31  ;;  %v5196_v31 = vld [vmem:[#allocation5 + $0x690] ss:$8 sps:$4 sm:$0xff]  }
 0x322   :  { %3890 = vmatpush1.bf16.msra.mxu0 %v5121_v15  ;;  %3590 = vmatprep.subr.bf16.mxu1 %v5126_v43  ;;  %v5199_v15 = vld [vmem:[#allocation5 + $0xd90] ss:$8 sps:$4 sm:$0xff]   ;;  %v5204_v43 = vld [vmem:[#allocation5 + $0x6a4] ss:$8 sps:$4 sm:$0xff]  }
 0x323   :  { %3891 = vmatprep.subr.bf16.mxu0 %v5129_v42  ;;  %v5207_v42 = vld [vmem:[#allocation5 + $0xda4] ss:$8 sps:$4 sm:$0xff]  }
 0x325   :  { %3591 = vmatpush1.bf16.msra.mxu1 %v5124_v38  ;;  %v5202_v38 = vld [vmem:[#allocation5 + $0x6a0] ss:$8 sps:$4 sm:$0xff]  }
 0x326   :  { %3892 = vmatpush1.bf16.msra.mxu0 %v5127_v32  ;;  %3592 = vmatprep.subr.bf16.mxu1 %v5132_v29  ;;  %v5205_v32 = vld [vmem:[#allocation5 + $0xda0] ss:$8 sps:$4 sm:$0xff]   ;;  %v5210_v29 = vld [vmem:[#allocation5 + $0x6b4] ss:$8 sps:$4 sm:$0xff]  }
 0x327   :  { %3893 = vmatprep.subr.bf16.mxu0 %v5135_v44  ;;  %v5213_v44 = vld [vmem:[#allocation5 + $0xdb4] ss:$8 sps:$4 sm:$0xff]  }
 0x329   :  { %3593 = vmatpush1.bf16.msra.mxu1 %v5130_v3  ;;  %v5208_v3 = vld [vmem:[#allocation5 + $0x6b0] ss:$8 sps:$4 sm:$0xff]  }
 0x32a   :  { %3894 = vmatpush1.bf16.msra.mxu0 %v5133_v54  ;;  %3594 = vmatprep.subr.bf16.mxu1 %v5138_v52  ;;  %v5211_v54 = vld [vmem:[#allocation5 + $0xdb0] ss:$8 sps:$4 sm:$0xff]   ;;  %v5216_v52 = vld [vmem:[#allocation5 + $0x6c4] ss:$8 sps:$4 sm:$0xff]  }
 0x32b   :  { %3895 = vmatprep.subr.bf16.mxu0 %v5141_v27  ;;  %v5219_v27 = vld [vmem:[#allocation5 + $0xdc4] ss:$8 sps:$4 sm:$0xff]  }
 0x32d   :  { %3595 = vmatpush1.bf16.msra.mxu1 %v5136_v60  ;;  %v5214_v60 = vld [vmem:[#allocation5 + $0x6c0] ss:$8 sps:$4 sm:$0xff]  }
 0x32e   :  { %3896 = vmatpush1.bf16.msra.mxu0 %v5139_v2  ;;  %3607 = vmatprep.subr.bf16.mxu1 %v5144_v20  ;;  %v5217_v2 = vld [vmem:[#allocation5 + $0xdc0] ss:$8 sps:$4 sm:$0xff]   ;;  %v5222_v20 = vld [vmem:[#allocation5 + $0x6d4] ss:$8 sps:$4 sm:$0xff]  }
 0x32f   :  { %3908 = vmatprep.subr.bf16.mxu0 %v5147_v7  ;;  %v5225_v7 = vld [vmem:[#allocation5 + $0xdd4] ss:$8 sps:$4 sm:$0xff]  }
 0x330   :  { %3597 = vmatmul.mubr.bf16.vlgmr.msra.gmra.mrb[0].mxu1 %v6226_v34  ;;  %v5231_v34 = vld [vmem:[#allocation5 + $0xde4] ss:$8 sps:$4 sm:$0xff]  }
 0x331   :  { %3898 = vmatmul.mubr.bf16.vlgmr.msra.gmra.mrb[0].mxu0 %v6227_v49  ;;  %3608 = vmatpush1.bf16.msra.mxu1 %v5142_v23  ;;  %v5220_v23 = vld [vmem:[#allocation5 + $0x6d0] ss:$8 sps:$4 sm:$0xff]   ;;  %v5229_v49 = vld [vmem:[#allocation5 + $0xde0] ss:$8 sps:$4 sm:$0xff]  }
 0x332   :  { %3639 = vmatprep.mubr.bf16.mxu1 %v6228_v47  ;;  %3909 = vmatpush1.bf16.msra.mxu0 %v5145_v8  ;;  %v5223_v8 = vld [vmem:[#allocation5 + $0xdd0] ss:$8 sps:$4 sm:$0xff]   ;;  %v5237_v47 = vld [vmem:[#allocation5 + $0xdf4] ss:$8 sps:$4 sm:$0xff]  }
 0x333   :  { %3940 = vmatprep.mubr.bf16.mxu0 %v6229_v40  ;;  %3609 = vmatprep.subr.bf16.mxu1 %v5150_v46  ;;  %v5228_v46 = vld [vmem:[#allocation5 + $0x6e4] ss:$8 sps:$4 sm:$0xff]  }
 0x334   :  { %3910 = vmatprep.subr.bf16.mxu0 %v5153_v13  ;;  %v5226_v13 = vld [vmem:[#allocation5 + $0x6e0] ss:$8 sps:$4 sm:$0xff]   ;;  %v5240_v40 = vld [vmem:[#allocation5 + $0xe04] ss:$8 sps:$4 sm:$0xff]  }
 0x335   :  { %3610 = vmatpush1.bf16.msra.mxu1 %v5148_v12  ;;  %v5234_v12 = vld [vmem:[#allocation5 + $0x6f4] ss:$8 sps:$4 sm:$0xff]  }
 0x336   :  { %3911 = vmatpush1.bf16.msra.mxu0 %v5151_v33  ;;  %3611 = vmatprep.subr.bf16.mxu1 %v5156_v39  ;;  %v5232_v33 = vld [vmem:[#allocation5 + $0x6f0] ss:$8 sps:$4 sm:$0xff]  }
 0x337   :  { %3912 = vmatprep.subr.bf16.mxu0 %v5159_v10  ;;  %v5235_v39 = vld [vmem:[#allocation5 + $0xdf0] ss:$8 sps:$4 sm:$0xff]   ;;  %v5238_v10 = vld [vmem:[#allocation5 + $0xe00] ss:$8 sps:$4 sm:$0xff]  }
 0x339   :  { %3612 = vmatpush1.bf16.msra.mxu1 %v5154_v57  ;;  %v5243_v57 = vld [vmem:[#allocation5 + $0xe14] ss:$8 sps:$4 sm:$0xff]  }
 0x33a   :  { %3913 = vmatpush1.bf16.msra.mxu0 %v5157_v63  ;;  %3613 = vmatprep.subr.bf16.mxu1 %v5162_v14  ;;  %v6230_v63 = vpack.c.bf16 %v6052_v51, %v5916_v21  ;;  %v6231_v14 = vpack.c.bf16 %v6056_v0, %v5920_v11  ;;  %v5252_v21 = vld [vmem:[#allocation5 + $0xe44] ss:$8 sps:$4 sm:$0xff]   ;;  %v5250_v51 = vld [vmem:[#allocation5 + $0xe40] ss:$8 sps:$4 sm:$0xff]   ;;  %v5255_v11 = vld [vmem:[#allocation5 + $0xe54] ss:$8 sps:$4 sm:$0xff]  }
 0x33b   :  { %3914 = vmatprep.subr.bf16.mxu0 %v5165_v17  ;;  %v6232_v17 = vpack.c.bf16 %v6074_v36, %v5924_v1  ;;  %v5253_v0 = vld [vmem:[#allocation5 + $0xe50] ss:$8 sps:$4 sm:$0xff]   ;;  %v5258_v1 = vld [vmem:[#allocation5 + $0xe64] ss:$8 sps:$4 sm:$0xff]   ;;  %v5256_v36 = vld [vmem:[#allocation5 + $0xe60] ss:$8 sps:$4 sm:$0xff]  }
 0x33d   :  { %3614 = vmatpush1.bf16.msra.mxu1 %v5160_v26  ;;  %v5241_v26 = vld [vmem:[#allocation5 + $0xe10] ss:$8 sps:$4 sm:$0xff]  }
 0x33e   :  { %3915 = vmatpush1.bf16.msra.mxu0 %v5163_v30  ;;  %3615 = vmatprep.subr.bf16.mxu1 %v5168_v9  ;;  %v5246_v30 = vld [vmem:[#allocation5 + $0xe24] ss:$8 sps:$4 sm:$0xff]   ;;  %v5244_v9 = vld [vmem:[#allocation5 + $0xe20] ss:$8 sps:$4 sm:$0xff]  }
 0x33f   :  { %3916 = vmatprep.subr.bf16.mxu0 %v5171_v19  ;;  %v5249_v19 = vld [vmem:[#allocation5 + $0xe34] ss:$8 sps:$4 sm:$0xff]  }
 0x341   :  { %3616 = vmatpush1.bf16.msra.mxu1 %v5166_v56  ;;  %v5247_v56 = vld [vmem:[#allocation5 + $0xe30] ss:$8 sps:$4 sm:$0xff]  }
 0x342   :  { %3917 = vmatpush1.bf16.msra.mxu0 %v5169_v45  ;;  %3617 = vmatprep.subr.bf16.mxu1 %v5174_v25  ;;  %v5261_v45 = vld [vmem:[#allocation5 + $0xe74] ss:$8 sps:$4 sm:$0xff]   ;;  %v5259_v25 = vld [vmem:[#allocation5 + $0xe70] ss:$8 sps:$4 sm:$0xff]  }
 0x343   :  { %3918 = vmatprep.subr.bf16.mxu0 %v5177_v24  ;;  %v5264_v24 = vld [vmem:[#allocation5 + $0xe84] ss:$8 sps:$4 sm:$0xff]  }
 0x345   :  { %3618 = vmatpush1.bf16.msra.mxu1 %v5172_v28  ;;  %v5262_v28 = vld [vmem:[#allocation5 + $0xe80] ss:$8 sps:$4 sm:$0xff]  }
 0x346   :  { %3919 = vmatpush1.bf16.msra.mxu0 %v5175_v4  ;;  %3619 = vmatprep.subr.bf16.mxu1 %v5180_v6  ;;  %v5267_v4 = vld [vmem:[#allocation5 + $0xe94] ss:$8 sps:$4 sm:$0xff]   ;;  %v5265_v6 = vld [vmem:[#allocation5 + $0xe90] ss:$8 sps:$4 sm:$0xff]  }
 0x347   :  { %3920 = vmatprep.subr.bf16.mxu0 %v5183_v59  ;;  %v5270_v59 = vld [vmem:[#allocation5 + $0xea4] ss:$8 sps:$4 sm:$0xff]  }
 0x349   :  { %3620 = vmatpush1.bf16.msra.mxu1 %v5178_v55  ;;  %v5268_v55 = vld [vmem:[#allocation5 + $0xea0] ss:$8 sps:$4 sm:$0xff]  }
 0x34a   :  { %3921 = vmatpush1.bf16.msra.mxu0 %v5181_v62  ;;  %3621 = vmatprep.subr.bf16.mxu1 %v5186_v61  ;;  %v5273_v62 = vld [vmem:[#allocation5 + $0xeb4] ss:$8 sps:$4 sm:$0xff]   ;;  %v5271_v61 = vld [vmem:[#allocation5 + $0xeb0] ss:$8 sps:$4 sm:$0xff]  }
 0x34b   :  { %3922 = vmatprep.subr.bf16.mxu0 %v5189_v50  ;;  %v5276_v50 = vld [vmem:[#allocation5 + $0xec4] ss:$8 sps:$4 sm:$0xff]  }
 0x34d   :  { %3622 = vmatpush1.bf16.msra.mxu1 %v5184_v41  ;;  %v5274_v41 = vld [vmem:[#allocation5 + $0xec0] ss:$8 sps:$4 sm:$0xff]  }
 0x34e   :  { %3923 = vmatpush1.bf16.msra.mxu0 %v5187_v16  ;;  %3623 = vmatprep.subr.bf16.mxu1 %v5192_v53  ;;  %v5279_v16 = vld [vmem:[#allocation5 + $0xed4] ss:$8 sps:$4 sm:$0xff]   ;;  %v5277_v53 = vld [vmem:[#allocation5 + $0xed0] ss:$8 sps:$4 sm:$0xff]  }
 0x34f   :  { %3924 = vmatprep.subr.bf16.mxu0 %v5195_v37  ;;  %v5282_v37 = vld [vmem:[#allocation5 + $0xee4] ss:$8 sps:$4 sm:$0xff]  }
 0x351   :  { %3624 = vmatpush1.bf16.msra.mxu1 %v5190_v18  ;;  %v5280_v18 = vld [vmem:[#allocation5 + $0xee0] ss:$8 sps:$4 sm:$0xff]  }
 0x352   :  { %3925 = vmatpush1.bf16.msra.mxu0 %v5193_v58  ;;  %3625 = vmatprep.subr.bf16.mxu1 %v5198_v5  ;;  %v5285_v58 = vld [vmem:[#allocation5 + $0xef4] ss:$8 sps:$4 sm:$0xff]   ;;  %v5283_v5 = vld [vmem:[#allocation5 + $0xef0] ss:$8 sps:$4 sm:$0xff]  }
 0x353   :  { %3926 = vmatprep.subr.bf16.mxu0 %v5201_v35  ;;  %v6233_v35 = vpack.c.bf16 %v6082_v22, %v6078_v48 }
 0x355   :  { %3626 = vmatpush1.bf16.msra.mxu1 %v5196_v31 }
 0x356   :  { %3927 = vmatpush1.bf16.msra.mxu0 %v5199_v15  ;;  %3627 = vmatprep.subr.bf16.mxu1 %v5204_v43 }
 0x357   :  { %3928 = vmatprep.subr.bf16.mxu0 %v5207_v42 }
 0x359   :  { %3628 = vmatpush1.bf16.msra.mxu1 %v5202_v38  ;;  %v939_v38 = vlaneseq }
 0x35a   :  { %3929 = vmatpush1.bf16.msra.mxu0 %v5205_v32  ;;  %3629 = vmatprep.subr.bf16.mxu1 %v5210_v29 }
 0x35b   :  { %3930 = vmatprep.subr.bf16.mxu0 %v5213_v44  ;;  %v940_v32 = vshrl.u32 %v939_v38, 7  ;;  %v937_v44 = vld [vmem:[#allocation7] sm:$0x3] }
 0x35d   :  { %3630 = vmatpush1.bf16.msra.mxu1 %v5208_v3  ;;  %v941_v29 = vsub.s32 0, %v940_v32  ;;  %v945_v3 = vsub.s32 1, %v940_v32 }
 0x35e   :  { %3931 = vmatpush1.bf16.msra.mxu0 %v5211_v54  ;;  %3631 = vmatprep.subr.bf16.mxu1 %v5216_v52 }
 0x35f   :  { %3932 = vmatprep.subr.bf16.mxu0 %v5219_v27  ;;  %v942_v54 = vrot.slane %v937_v44, %v941_v29  ;;  %v946_v52 = vrot.slane %v937_v44, %v945_v3 }
 0x361   :  { %3632 = vmatpush1.bf16.msra.mxu1 %v5214_v60 }
 0x362   :  { %3933 = vmatpush1.bf16.msra.mxu0 %v5217_v2  ;;  %3633 = vmatprep.subr.bf16.mxu1 %v5222_v20 }
 0x363   :  { %3934 = vmatprep.subr.bf16.mxu0 %v5225_v7 }
 0x365   :  { %3634 = vmatpush1.bf16.msra.mxu1 %v5220_v23 }
 0x366   :  { %3935 = vmatpush1.bf16.msra.mxu0 %v5223_v8  ;;  %3635 = vmatprep.subr.bf16.mxu1 %v5228_v46 }
 0x367   :  { %3936 = vmatprep.subr.bf16.mxu0 %v5231_v34 }
 0x369   :  { %3636 = vmatpush1.bf16.msra.mxu1 %v5226_v13 }
 0x36a   :  { %3937 = vmatpush1.bf16.msra.mxu0 %v5229_v49  ;;  %3637 = vmatprep.subr.bf16.mxu1 %v5234_v12 }
 0x36b   :  { %3938 = vmatprep.subr.bf16.mxu0 %v5237_v47 }
 0x36d   :  { %3638 = vmatpush1.bf16.msra.mxu1 %v5232_v33 }
 0x36e   :  { %3939 = vmatpush1.bf16.msra.mxu0 %v5235_v39 }
 0x36f   :  { %3951 = vmatprep.subr.bf16.mxu0 %v5240_v40 }
 0x370   :  { %3640 = vmatmul.mubr.bf16.vlgmr.msra.gmra.mrb[0].mxu1 %v6230_v63 }
 0x371   :  { %3941 = vmatmul.mubr.bf16.vlgmr.msra.gmra.mrb[0].mxu0 %v6231_v14 }
 0x372   :  { %3952 = vmatpush1.bf16.msra.mxu0 %v5238_v10  ;;  %3983 = vmatprep.mubr.bf16.mxu0 %v6232_v17 }
 0x373   :  { %3953 = vmatprep.subr.bf16.mxu0 %v5243_v57 }
 0x376   :  { %3954 = vmatpush1.bf16.msra.mxu0 %v5241_v26 }
 0x377   :  { %3955 = vmatprep.subr.bf16.mxu0 %v5246_v30 }
 0x37a   :  { %3956 = vmatpush1.bf16.msra.mxu0 %v5244_v9 }
 0x37b   :  { %3957 = vmatprep.subr.bf16.mxu0 %v5249_v19 }
 0x37e   :  { %3958 = vmatpush1.bf16.msra.mxu0 %v5247_v56 }
 0x37f   :  { %3959 = vmatprep.subr.bf16.mxu0 %v5252_v21 }
 0x382   :  { %3960 = vmatpush1.bf16.msra.mxu0 %v5250_v51 }
 0x383   :  { %3961 = vmatprep.subr.bf16.mxu0 %v5255_v11 }
 0x386   :  { %3962 = vmatpush1.bf16.msra.mxu0 %v5253_v0 }
 0x387   :  { %3963 = vmatprep.subr.bf16.mxu0 %v5258_v1 }
 0x38a   :  { %3964 = vmatpush1.bf16.msra.mxu0 %v5256_v36 }
 0x38b   :  { %3965 = vmatprep.subr.bf16.mxu0 %v5261_v45 }
 0x38e   :  { %3966 = vmatpush1.bf16.msra.mxu0 %v5259_v25 }
 0x38f   :  { %3967 = vmatprep.subr.bf16.mxu0 %v5264_v24 }
 0x392   :  { %3968 = vmatpush1.bf16.msra.mxu0 %v5262_v28 }
 0x393   :  { %3969 = vmatprep.subr.bf16.mxu0 %v5267_v4 }
 0x396   :  { %3970 = vmatpush1.bf16.msra.mxu0 %v5265_v6 }
 0x397   :  { %3971 = vmatprep.subr.bf16.mxu0 %v5270_v59 }
 0x39a   :  { %3972 = vmatpush1.bf16.msra.mxu0 %v5268_v55 }
 0x39b   :  { %3973 = vmatprep.subr.bf16.mxu0 %v5273_v62 }
 0x39e   :  { %3974 = vmatpush1.bf16.msra.mxu0 %v5271_v61 }
 0x39f   :  { %3975 = vmatprep.subr.bf16.mxu0 %v5276_v50 }
 0x3a2   :  { %3976 = vmatpush1.bf16.msra.mxu0 %v5274_v41 }
 0x3a3   :  { %3977 = vmatprep.subr.bf16.mxu0 %v5279_v16 }
 0x3a6   :  { %3978 = vmatpush1.bf16.msra.mxu0 %v5277_v53 }
 0x3a7   :  { %3979 = vmatprep.subr.bf16.mxu0 %v5282_v37 }
 0x3aa   :  { %3980 = vmatpush1.bf16.msra.mxu0 %v5280_v18 }
 0x3ab   :  { %3981 = vmatprep.subr.bf16.mxu0 %v5285_v58 }
 0x3ae   :  { %3982 = vmatpush1.bf16.msra.mxu0 %v5283_v5 }
 0x3b1   :  { %3984 = vmatmul.mubr.bf16.vlgmr.msra.gmra.mrb[0].mxu0 %v6233_v35 }
 0x443   :  { %v3641_v31 = vpop.f32.mrb[0].mxu1 }
 0x444   :  { %v3643_v15 = vpop.f32.mrb[1].mxu1  ;;  %v4496_v27 = vadd.f32 %v3641_v31, %v942_v54 }
 0x445   :  { %v3645_v43 = vpop.f32.mrb[2].mxu1  ;;  %v4498_v60 = vadd.f32 %v3643_v15, %v946_v52 }
 0x446   :  { %v3647_v42 = vpop.f32.mrb[3].mxu1  ;;  %v4500_v20 = vadd.f32 %v3645_v43, %v942_v54 }
 0x447   :  { %v4502_v22 = vadd.f32 %v3647_v42, %v946_v52 }
 0x484   :  { %v3985_v2 = vpop.f32.mrb[0].mxu0 }
 0x485   :  { %v4497_v7 = vadd.f32 %v4496_v27, %v3985_v2  ;;  %v3987_v23 = vpop.f32.mrb[1].mxu0 }
 0x486   :  { %v4499_v48 = vadd.f32 %v4498_v60, %v3987_v23  ;;  %v3989_v8 = vpop.f32.mrb[2].mxu0 }
 0x487   :  { %3994 = vst [vmem:[#allocation8] sm:$0xff] %v4497_v7  ;;  %v4501_v46 = vadd.f32 %v4500_v20, %v3989_v8  ;;  %v3991_v34 = vpop.f32.mrb[3].mxu0 }
 0x488   :  { %3995 = vst [vmem:[#allocation8 + $0x8] sm:$0xff] %v4499_v48  ;;  %v4503_v13 = vadd.f32 %v4502_v22, %v3991_v34 }
 0x489   :  { %3996 = vst [vmem:[#allocation8 + $0x10] sm:$0xff] %v4501_v46 }
 0x48a   :  { %3997 = vst [vmem:[#allocation8 + $0x18] sm:$0xff] %v4503_v13 }
 0x48b   :  { %5427 = shalt.err (!%p5424_p0)
}
 0x48c   :  { %s5428_s27 = scalar_lea.hbm %s6175_s3, 512 }
 0x48d   :  { %p5429_p1 = scmp.ne.s32.totalorder %s6175_s3, %s5428_s27  ;;  %p5432_p2 = scmp.lt.u32.totalorder %s5428_s27, %s6175_s3 }
 0x48f   :  { %p5434_p3 = pnand %p5432_p2, %p5429_p1 }
 0x491   :  { %5437 = shalt.err (!%p5434_p3)
}
 0x492   :  { %s5452_s5 = smov 256   ;;  %s5453_s6 = smov 16  }
 0x493   :  { %4009 = dma.vmem_to_hbm [thread:$0]  %s4004_s23, 512, %s6175_s3, [#allocation4], %s5452_s5, %s5452_s5, %s5453_s6  }
 0x494   :  { %5442 = dma.done.wait [#allocation4], 512  }
 0x495   :  { %5443 = vsyncadd [#allocation4], 4294966784 }
 0x496   :  { %4013 = vsyncpa [#allocation3], 1 }
 0x497   :  { %4014 = vsyncpa [#allocation6], 1 }
 0x498   :  { %4015 = vsyncpa [#allocation4], 1 }

</bundles_post_ra>
